<compile_context>
chip_gen: v5e
topology: v5e:2x2
jax: 0.10.0
libtpu: 0.0.40
codegen_flags: <defaults>
</compile_context>

<pallas_src>
import jax
import jax.numpy as jnp
from jax.experimental import pallas as pl
from jax.experimental.pallas import tpu as pltpu


def _round_up(a: int, b: int) -> int:
    return (a + b - 1) // b * b


# --------------------------------------------------------------------------
# Grouped SwiGLU GEMM kernel.
#   grid = (num_row_tiles, num_h_tiles)
#   Every row tile belongs to exactly one expert (groups are tile-aligned);
#   the expert id per tile is scalar-prefetched and drives the weight index_maps.
#   y[r, :] = cw[r] * ( silu(x[r] @ w1_e) * (x[r] @ w3_e) ) @ w2_e
# --------------------------------------------------------------------------
def _gmm_swiglu_kernel(tile_expert_ref, tile_active_ref,       # scalar-prefetch (SMEM)
                       x_ref, cw_ref, w1_ref, w3_ref, w2_ref,  # inputs (VMEM)
                       o_ref,                                  # output (VMEM)
                       acc_ref):                               # f32 scratch (VMEM)
    t = pl.program_id(0)
    h = pl.program_id(1)

    @pl.when(h == 0)
    def _():
        acc_ref[...] = jnp.zeros_like(acc_ref)

    @pl.when(tile_active_ref[t] != 0)
    def _():
        x = x_ref[...]                                                  # (TM, D) bf16
        h1 = jnp.dot(x, w1_ref[0], preferred_element_type=jnp.float32)  # (TM, TH) f32
        h3 = jnp.dot(x, w3_ref[0], preferred_element_type=jnp.float32)  # (TM, TH) f32
        # SwiGLU elementwise math in f32 (EUP sigmoid; safe on v5e too).
        act = (h1 * jax.nn.sigmoid(h1)) * h3
        acc_ref[...] += jnp.dot(act.astype(w2_ref.dtype), w2_ref[0],
                                preferred_element_type=jnp.float32)      # (TM, D) f32

    @pl.when(h == pl.num_programs(1) - 1)
    def _():
        # Fold the per-row combine weight and cast to bf16 for writeback.
        o_ref[...] = (cw_ref[...] * acc_ref[...]).astype(o_ref.dtype)


def _vmem_limit_bytes(tm: int, d: int, th: int) -> int:
    # Double-buffered inputs/outputs + resident f32 accumulator.
    est = (2 * tm * d * 2          # x tile (bf16)
           + 2 * tm * 128 * 4      # combine-weight column (f32, lane-padded)
           + 3 * 2 * d * th * 2    # w1 / w3 / w2 blocks (bf16)
           + 2 * tm * d * 2        # output block (bf16)
           + tm * d * 4)           # f32 accumulator scratch
    try:
        cap = int(pltpu.get_tpu_info().vmem_capacity_bytes)
    except Exception:
        cap = 64 << 20             # v7x-safe fallback
    return int(min(max(est + (8 << 20), 32 << 20), int(cap * 0.9)))


def gmm_swiglu(x_disp, cw_disp, tile_expert, tile_active, w1s, w3s, w2s, *, tm, th):
    """x_disp: (S, D) bf16 dispatched rows; cw_disp: (S, 1) f32 combine weights;
    tile_expert/tile_active: (S//tm,) int32; w*: (E_tot, ...) stacked bf16 weights."""
    S_rows, D = x_disp.shape
    E_tot, _, H = w1s.shape
    assert S_rows % tm == 0 and H % th == 0 and tm % 8 == 0
    num_tiles = S_rows // tm
    num_h = H // th

    grid_spec = pltpu.PrefetchScalarGridSpec(
        num_scalar_prefetch=2,
        grid=(num_tiles, num_h),
        in_specs=[
            pl.BlockSpec((tm, D), lambda t, h, te, act: (t, 0)),          # x (resident over h)
            pl.BlockSpec((tm, 1), lambda t, h, te, act: (t, 0)),          # combine weights
            pl.BlockSpec((1, D, th), lambda t, h, te, act: (te[t], 0, h)),  # w1_e[:, h-chunk]
            pl.BlockSpec((1, D, th), lambda t, h, te, act: (te[t], 0, h)),  # w3_e[:, h-chunk]
            pl.BlockSpec((1, th, D), lambda t, h, te, act: (te[t], h, 0)),  # w2_e[h-chunk, :]
        ],
        out_specs=pl.BlockSpec((tm, D), lambda t, h, te, act: (t, 0)),    # bf16 output tile
        scratch_shapes=[pltpu.VMEM((tm, D), jnp.float32)],                # f32 accumulator
    )

    cost = pl.CostEstimate(
        flops=int(6 * S_rows * D * H + 4 * S_rows * H + 2 * S_rows * D),
        transcendentals=int(S_rows * H),
        bytes_accessed=int(2 * S_rows * D * 2 + S_rows * 4
                           + num_tiles * 3 * D * H * 2),
    )

    return pl.pallas_call(
        _gmm_swiglu_kernel,
        out_shape=jax.ShapeDtypeStruct((S_rows, D), x_disp.dtype),
        grid_spec=grid_spec,
        compiler_params=pltpu.CompilerParams(
            dimension_semantics=("parallel", "arbitrary"),
            vmem_limit_bytes=_vmem_limit_bytes(tm, D, th),
        ),
        cost_estimate=cost,
    )(tile_expert, tile_active, x_disp, cw_disp, w1s, w3s, w2s)


# --------------------------------------------------------------------------
# JAX glue: routing, sorted/tile-aligned dispatch, weight stacking, combine.
# --------------------------------------------------------------------------
def _pad_h(w, h_target, axis):
    pad = h_target - w.shape[axis]
    if pad == 0:
        return w
    widths = [(0, 0)] * w.ndim
    widths[axis] = (0, pad)
    return jnp.pad(w, widths)  # zero-padded H columns/rows contribute exactly 0


def moe_forward(x, params, *, tm=128, th=128, compute_dtype=jnp.bfloat16):
    """MoEBase.forward: x (B, S, d_model) -> (B, S, d_model).

    Sizing guidance: production tm >= 256 (v5e) / >= 640 (v6e; and per-TC on v7x
    under megacore, since each core re-streams the weights), traded against the
    per-expert padding (each expert group is padded to a multiple of tm).
    th should be a multiple of 256 on v6e/v7x to keep the 2x256x256 MXU full.
    """
    B, S_seq, D = x.shape
    T = B * S_seq
    xt = x.reshape(T, D)
    blocks = params["blocks"]

    top_k_sum = sum(blk["top_k"] for blk in blocks)
    denom = float(top_k_sum + 1)

    # ---- routing (XLA: E << 128 lanes, fuses with top_k/one_hot) ----
    token_ids = jnp.arange(T, dtype=jnp.int32)
    a_expert, a_token, a_weight = [], [], []
    off = 0
    for blk in blocks:
        E = blk["w1"].shape[0]
        k = blk["top_k"]
        logits = (xt @ blk["w_router"]).astype(jnp.float32)
        probs = jax.nn.softmax(logits, axis=-1)
        top_w, top_i = jax.lax.top_k(probs, k)                    # (T, k)
        a_expert.append((top_i + off).astype(jnp.int32).reshape(-1))
        a_token.append(jnp.broadcast_to(token_ids[:, None], (T, k)).reshape(-1))
        # Fold the *top_k and the final /(top_k_sum + 1) into the combine weight.
        a_weight.append((top_w * (k / denom)).astype(jnp.float32).reshape(-1))
        off += E
    E_all = off
    # Shared MLP = one extra expert assigned to every token with weight 1/denom.
    a_expert.append(jnp.full((T,), E_all, jnp.int32))
    a_token.append(token_ids)
    a_weight.append(jnp.full((T,), 1.0 / denom, jnp.float32))
    a_expert = jnp.concatenate(a_expert)
    a_token = jnp.concatenate(a_token)
    a_weight = jnp.concatenate(a_weight)
    E_tot = E_all + 1
    N = int(a_expert.shape[0])                    # T * (top_k_sum + 1), static

    # ---- sort assignments by expert and tile-align each expert group ----
    order = jnp.argsort(a_expert)                 # stable by default
    s_expert = a_expert[order]
    s_token = a_token[order]
    s_weight = a_weight[order]

    counts = jnp.bincount(s_expert, length=E_tot)                     # (E_tot,)
    padded_counts = (counts + tm - 1) // tm * tm
    padded_ends = jnp.cumsum(padded_counts)
    padded_starts = padded_ends - padded_counts
    unpadded_starts = jnp.cumsum(counts) - counts
    dest = padded_starts[s_expert] + (jnp.arange(N, dtype=jnp.int32)
                                      - unpadded_starts[s_expert])

    S_rows = _round_up(N + E_tot * (tm - 1), tm)  # static upper bound on padded rows
    num_tiles = S_rows // tm

    xt_c = xt.astype(compute_dtype)
    x_disp = jnp.zeros((S_rows, D), compute_dtype).at[dest].set(xt_c[s_token])
    cw_disp = jnp.zeros((S_rows, 1), jnp.float32).at[dest, 0].set(s_weight)
    tok_disp = jnp.zeros((S_rows,), jnp.int32).at[dest].set(s_token)

    tile_start = jnp.arange(num_tiles, dtype=jnp.int32) * tm
    tile_expert = jnp.minimum(
        jnp.searchsorted(padded_ends, tile_start, side="right"), E_tot - 1
    ).astype(jnp.int32)
    tile_active = (tile_start < padded_ends[-1]).astype(jnp.int32)

    # ---- stack expert + shared weights, pad H to a multiple of th ----
    h_max = max(max(blk["w1"].shape[2] for blk in blocks),
                params["shared_mlp"]["w1"].shape[1])
    th = min(th, _round_up(h_max, 128))
    h_pad = _round_up(h_max, th)

    w1_all, w3_all, w2_all = [], [], []
    for blk in blocks:
        w1_all.append(_pad_h(blk["w1"], h_pad, axis=2))
        w3_all.append(_pad_h(blk["w3"], h_pad, axis=2))
        w2_all.append(_pad_h(blk["w2"], h_pad, axis=1))
    sp = params["shared_mlp"]
    w1_all.append(_pad_h(sp["w1"][None], h_pad, axis=2))
    w3_all.append(_pad_h(sp["w3"][None], h_pad, axis=2))
    w2_all.append(_pad_h(sp["w2"][None], h_pad, axis=1))
    # In a real model the weights are stored pre-stacked in bf16; this is one-time glue.
    w1s = jnp.concatenate(w1_all, axis=0).astype(compute_dtype)
    w3s = jnp.concatenate(w3_all, axis=0).astype(compute_dtype)
    w2s = jnp.concatenate(w2_all, axis=0).astype(compute_dtype)

    # ---- grouped SwiGLU GEMM kernel + combine (scatter-add over tokens) ----
    y_disp = gmm_swiglu(x_disp, cw_disp, tile_expert, tile_active,
                        w1s, w3s, w2s, tm=tm, th=th)
    out = jnp.zeros((T, D), jnp.float32).at[tok_disp].add(y_disp.astype(jnp.float32))
    return out.astype(x.dtype).reshape(B, S_seq, D)


# --------------------------------------------------------------------------
# Pure-JAX dense reference (same bf16 operands / f32 accumulation) for checking.
# --------------------------------------------------------------------------
def _dense_gate(top_w, top_i, num_experts):
    onehot = jax.nn.one_hot(top_i, num_experts, dtype=jnp.float32)
    return jnp.sum(onehot * top_w[..., None].astype(jnp.float32), axis=1)  # (T, E)


def moe_forward_ref(x, params, compute_dtype=jnp.bfloat16):
    B, S_seq, D = x.shape
    xt = x.reshape(-1, D)
    xb = xt.astype(compute_dtype)
    outs, weights = [], []
    for blk in params["blocks"]:
        E = blk["w1"].shape[0]
        probs = jax.nn.softmax((xt @ blk["w_router"]).astype(jnp.float32), axis=-1)
        top_w, top_i = jax.lax.top_k(probs, blk["top_k"])
        gate = _dense_gate(top_w, top_i, E)
        h1 = jnp.einsum("td,edh->eth", xb, blk["w1"].astype(compute_dtype),
                        preferred_element_type=jnp.float32)
        h3 = jnp.einsum("td,edh->eth", xb, blk["w3"].astype(compute_dtype),
                        preferred_element_type=jnp.float32)
        act = jax.nn.silu(h1) * h3
        y = jnp.einsum("eth,ehd->etd", act.astype(compute_dtype),
                       blk["w2"].astype(compute_dtype),
                       preferred_element_type=jnp.float32)
        outs.append(jnp.einsum("te,etd->td", gate, y) * blk["top_k"])
        weights.append(blk["top_k"])
    sp = params["shared_mlp"]
    h1 = jnp.dot(xb, sp["w1"].astype(compute_dtype), preferred_element_type=jnp.float32)
    h3 = jnp.dot(xb, sp["w3"].astype(compute_dtype), preferred_element_type=jnp.float32)
    outs.append(jnp.dot((jax.nn.silu(h1) * h3).astype(compute_dtype),
                        sp["w2"].astype(compute_dtype),
                        preferred_element_type=jnp.float32))
    weights.append(1)
    return (sum(outs) / sum(weights)).astype(x.dtype).reshape(B, S_seq, D)


def init_params(key, d_model, num_experts_list, hidden_sizes_list, top_k_list,
                shared_hidden):
    params = {"blocks": []}
    for E, H, K in zip(num_experts_list, hidden_sizes_list, top_k_list):
        key, k_r, k1, k3, k2 = jax.random.split(key, 5)
        params["blocks"].append({
            "top_k": K,
            "w_router": jax.random.normal(k_r, (d_model, E), jnp.float32) * 0.1,
            "w1": jax.random.normal(k1, (E, d_model, H), jnp.float32) * 0.05,
            "w3": jax.random.normal(k3, (E, d_model, H), jnp.float32) * 0.05,
            "w2": jax.random.normal(k2, (E, H, d_model), jnp.float32) * 0.05,
        })
    key, s1, s3, s2 = jax.random.split(key, 4)
    params["shared_mlp"] = {
        "w1": jax.random.normal(s1, (d_model, shared_hidden), jnp.float32) * 0.05,
        "w3": jax.random.normal(s3, (d_model, shared_hidden), jnp.float32) * 0.05,
        "w2": jax.random.normal(s2, (shared_hidden, d_model), jnp.float32) * 0.05,
    }
    return params


if __name__ == "__main__":
    # Small TPU-friendly shapes: T = B*S = 256 tokens, d_model = 128,
    # hidden = 256 (2 H tiles of 128), shared hidden = 128 (exercises H padding).
    B, S, D = 2, 128, 128
    num_experts_list = [4, 8]
    hidden_sizes_list = [256, 256]
    top_k_list = [2, 1]
    shared_hidden = 128

    key = jax.random.PRNGKey(0)
    key, kx, kp = jax.random.split(key, 3)
    x = jax.random.normal(kx, (B, S, D), jnp.float32)
    params = init_params(kp, D, num_experts_list, hidden_sizes_list,
                         top_k_list, shared_hidden)

    out = moe_forward(x, params, tm=128, th=128)
    out = jax.block_until_ready(out)

    ref = moe_forward_ref(x, params)
    assert out.shape == (B, S, D)
    max_err = float(jnp.max(jnp.abs(out - ref)))
    assert jnp.allclose(out, ref, atol=2e-2, rtol=2e-2), \
        f"mismatch vs reference (max err {max_err})"

    print("KERNEL_OK")
</pallas_src>

<mosaic_0001>
module attributes {stable_mosaic.version = 11 : i64} {
  func.func @_gmm_swiglu_kernel(%arg0: i32, %arg1: i32, %arg2: memref<21xi32, #tpu.memory_space<smem>>, %arg3: memref<21xi32, #tpu.memory_space<smem>>, %arg4: memref<128x128xbf16, #tpu.memory_space<vmem>>, %arg5: memref<128x1xf32, #tpu.memory_space<vmem>>, %arg6: memref<1x128x128xbf16, #tpu.memory_space<vmem>>, %arg7: memref<1x128x128xbf16, #tpu.memory_space<vmem>>, %arg8: memref<1x128x128xbf16, #tpu.memory_space<vmem>>, %arg9: memref<128x128xbf16, #tpu.memory_space<vmem>>, %arg10: memref<128x128xf32, #tpu.memory_space<vmem>>) attributes {dimension_semantics = [#tpu.dimension_semantics<parallel>, #tpu.dimension_semantics<arbitrary>], iteration_bounds = array<i64: 21, 2>, scalar_prefetch = 2 : i64, scratch_operands = 1 : i64, tpu.core_type = #tpu.core_type<tc>, window_params = [{transform_indices = @transform_0, window_bounds = array<i64: 128, 128>}, {transform_indices = @transform_1, window_bounds = array<i64: 128, 1>}, {transform_indices = @transform_2, window_bounds = array<i64: 1, 128, 128>}, {transform_indices = @transform_3, window_bounds = array<i64: 1, 128, 128>}, {transform_indices = @transform_4, window_bounds = array<i64: 1, 128, 128>}, {transform_indices = @transform_5, window_bounds = array<i64: 128, 128>}]} {
    %c0_i32 = arith.constant 0 : i32
    %0 = arith.cmpi eq, %arg1, %c0_i32 : i32
    %1 = arith.extui %0 : i1 to i32
    %c0_i32_0 = arith.constant 0 : i32
    %2 = arith.cmpi ne, %1, %c0_i32_0 : i32
    scf.if %2 {
      %cst = arith.constant 0.000000e+00 : f32
      %11 = vector.broadcast %cst : f32 to vector<128x128xf32>
      %c0 = arith.constant 0 : index
      %c0_4 = arith.constant 0 : index
      %12 = vector.load %arg10[%c0, %c0_4] : memref<128x128xf32, #tpu.memory_space<vmem>>, vector<128x128xf32>
      tpu.vector_store %arg10[%c0, %c0_4], %11 {strides = array<i32>} : memref<128x128xf32, #tpu.memory_space<vmem>>, vector<128x128xf32>,
    } else {
    }
    %3 = arith.index_cast %arg0 : i32 to index
    %4 = memref.load %arg3[%3] : memref<21xi32, #tpu.memory_space<smem>>
    %c0_i32_1 = arith.constant 0 : i32
    %5 = arith.cmpi ne, %4, %c0_i32_1 : i32
    %6 = arith.extui %5 : i1 to i32
    %c0_i32_2 = arith.constant 0 : i32
    %7 = arith.cmpi ne, %6, %c0_i32_2 : i32
    scf.if %7 {
      %c0 = arith.constant 0 : index
      %c0_4 = arith.constant 0 : index
      %11 = vector.load %arg4[%c0, %c0_4] : memref<128x128xbf16, #tpu.memory_space<vmem>>, vector<128x128xbf16>
      %c0_5 = arith.constant 0 : index
      %c0_6 = arith.constant 0 : index
      %c0_7 = arith.constant 0 : index
      %12 = vector.load %arg6[%c0_5, %c0_6, %c0_7] : memref<1x128x128xbf16, #tpu.memory_space<vmem>>, vector<1x128x128xbf16>
      %13 = vector.shape_cast %12 : vector<1x128x128xbf16> to vector<128x128xbf16>
      %cst = arith.constant dense<0.000000e+00> : vector<128x128xf32>
      %14 = tpu.matmul %11, %13, %cst {dimension_numbers = #tpu.dot_dimension_numbers<[1], [0], [0], [1], [0, 0, 1, 1], [], []>} : vector<128x128xbf16>, vector<128x128xbf16>, vector<128x128xf32> -> vector<128x128xf32>
      %c0_8 = arith.constant 0 : index
      %c0_9 = arith.constant 0 : index
      %c0_10 = arith.constant 0 : index
      %15 = vector.load %arg7[%c0_8, %c0_9, %c0_10] : memref<1x128x128xbf16, #tpu.memory_space<vmem>>, vector<1x128x128xbf16>
      %16 = vector.shape_cast %15 : vector<1x128x128xbf16> to vector<128x128xbf16>
      %cst_11 = arith.constant dense<0.000000e+00> : vector<128x128xf32>
      %17 = tpu.matmul %11, %16, %cst_11 {dimension_numbers = #tpu.dot_dimension_numbers<[1], [0], [0], [1], [0, 0, 1, 1], [], []>} : vector<128x128xbf16>, vector<128x128xbf16>, vector<128x128xf32> -> vector<128x128xf32>
      %18 = arith.negf %14 : vector<128x128xf32>
      %19 = math.exp %18 : vector<128x128xf32>
      %cst_12 = arith.constant 1.000000e+00 : f32
      %20 = vector.broadcast %cst_12 : f32 to vector<128x128xf32>
      %21 = arith.addf %20, %19 : vector<128x128xf32>
      %22 = arith.divf %20, %21 : vector<128x128xf32>
      %23 = arith.mulf %14, %22 : vector<128x128xf32>
      %24 = arith.mulf %23, %17 : vector<128x128xf32>
      %c0_13 = arith.constant 0 : index
      %c0_14 = arith.constant 0 : index
      %25 = vector.load %arg10[%c0_13, %c0_14] : memref<128x128xf32, #tpu.memory_space<vmem>>, vector<128x128xf32>
      %26 = arith.truncf %24 : vector<128x128xf32> to vector<128x128xbf16>
      %c0_15 = arith.constant 0 : index
      %c0_16 = arith.constant 0 : index
      %c0_17 = arith.constant 0 : index
      %27 = vector.load %arg8[%c0_15, %c0_16, %c0_17] : memref<1x128x128xbf16, #tpu.memory_space<vmem>>, vector<1x128x128xbf16>
      %28 = vector.shape_cast %27 : vector<1x128x128xbf16> to vector<128x128xbf16>
      %cst_18 = arith.constant dense<0.000000e+00> : vector<128x128xf32>
      %29 = tpu.matmul %26, %28, %cst_18 {dimension_numbers = #tpu.dot_dimension_numbers<[1], [0], [0], [1], [0, 0, 1, 1], [], []>} : vector<128x128xbf16>, vector<128x128xbf16>, vector<128x128xf32> -> vector<128x128xf32>
      %30 = arith.addf %25, %29 : vector<128x128xf32>
      %c0_19 = arith.constant 0 : index
      %c0_20 = arith.constant 0 : index
      %31 = vector.load %arg10[%c0_19, %c0_20] : memref<128x128xf32, #tpu.memory_space<vmem>>, vector<128x128xf32>
      tpu.vector_store %arg10[%c0_19, %c0_20], %30 {strides = array<i32>} : memref<128x128xf32, #tpu.memory_space<vmem>>, vector<128x128xf32>,
    } else {
    }
    %c1_i32 = arith.constant 1 : i32
    %8 = arith.cmpi eq, %arg1, %c1_i32 : i32
    %9 = arith.extui %8 : i1 to i32
    %c0_i32_3 = arith.constant 0 : i32
    %10 = arith.cmpi ne, %9, %c0_i32_3 : i32
    scf.if %10 {
      %c0 = arith.constant 0 : index
      %c0_4 = arith.constant 0 : index
      %11 = vector.load %arg5[%c0, %c0_4] : memref<128x1xf32, #tpu.memory_space<vmem>>, vector<128x1xf32>
      %c0_5 = arith.constant 0 : index
      %c0_6 = arith.constant 0 : index
      %12 = vector.load %arg10[%c0_5, %c0_6] : memref<128x128xf32, #tpu.memory_space<vmem>>, vector<128x128xf32>
      %13 = vector.broadcast %11 : vector<128x1xf32> to vector<128x128xf32>
      %14 = arith.mulf %13, %12 : vector<128x128xf32>
      %15 = arith.truncf %14 : vector<128x128xf32> to vector<128x128xbf16>
      %c0_7 = arith.constant 0 : index
      %c0_8 = arith.constant 0 : index
      %16 = vector.load %arg9[%c0_7, %c0_8] : memref<128x128xbf16, #tpu.memory_space<vmem>>, vector<128x128xbf16>
      tpu.vector_store %arg9[%c0_7, %c0_8], %15 {strides = array<i32>} : memref<128x128xbf16, #tpu.memory_space<vmem>>, vector<128x128xbf16>,
    } else {
    }
    return
  }
  func.func @transform_0(%arg0: i32, %arg1: i32, %arg2: memref<21xi32, #tpu.memory_space<smem>>, %arg3: memref<21xi32, #tpu.memory_space<smem>>) -> (i32, i32) {
    %c0_i32 = arith.constant 0 : i32
    %c0_i32_0 = arith.constant 0 : i32
    return %arg0, %c0_i32 : i32, i32
  }
  func.func @transform_1(%arg0: i32, %arg1: i32, %arg2: memref<21xi32, #tpu.memory_space<smem>>, %arg3: memref<21xi32, #tpu.memory_space<smem>>) -> (i32, i32) {
    %c0_i32 = arith.constant 0 : i32
    %c0_i32_0 = arith.constant 0 : i32
    return %arg0, %c0_i32 : i32, i32
  }
  func.func @transform_2(%arg0: i32, %arg1: i32, %arg2: memref<21xi32, #tpu.memory_space<smem>>, %arg3: memref<21xi32, #tpu.memory_space<smem>>) -> (i32, i32, i32) {
    %0 = arith.index_cast %arg0 : i32 to index
    %1 = memref.load %arg2[%0] : memref<21xi32, #tpu.memory_space<smem>>
    %c0_i32 = arith.constant 0 : i32
    %c0_i32_0 = arith.constant 0 : i32
    return %1, %c0_i32, %arg1 : i32, i32, i32
  }
  func.func @transform_3(%arg0: i32, %arg1: i32, %arg2: memref<21xi32, #tpu.memory_space<smem>>, %arg3: memref<21xi32, #tpu.memory_space<smem>>) -> (i32, i32, i32) {
    %0 = arith.index_cast %arg0 : i32 to index
    %1 = memref.load %arg2[%0] : memref<21xi32, #tpu.memory_space<smem>>
    %c0_i32 = arith.constant 0 : i32
    %c0_i32_0 = arith.constant 0 : i32
    return %1, %c0_i32, %arg1 : i32, i32, i32
  }
  func.func @transform_4(%arg0: i32, %arg1: i32, %arg2: memref<21xi32, #tpu.memory_space<smem>>, %arg3: memref<21xi32, #tpu.memory_space<smem>>) -> (i32, i32, i32) {
    %0 = arith.index_cast %arg0 : i32 to index
    %1 = memref.load %arg2[%0] : memref<21xi32, #tpu.memory_space<smem>>
    %c0_i32 = arith.constant 0 : i32
    %c0_i32_0 = arith.constant 0 : i32
    return %1, %arg1, %c0_i32 : i32, i32, i32
  }
  func.func @transform_5(%arg0: i32, %arg1: i32, %arg2: memref<21xi32, #tpu.memory_space<smem>>, %arg3: memref<21xi32, #tpu.memory_space<smem>>) -> (i32, i32) {
    %c0_i32 = arith.constant 0 : i32
    %c0_i32_0 = arith.constant 0 : i32
    return %arg0, %c0_i32 : i32, i32
  }
}

</mosaic_0001>

<bundles_post_ra>
// kernel: tpu_custom_call.1
= control target key start
LH: loop header
LB: loop body
LE: loop exit
PB: predicated region body
PF: predicated region fallthrough
CT: control target
= control target key end

     0   :  { %s2473_s30 = smov [#allocation4]   ;;  %s2474_s8 = smov [#allocation5]   ;;  %s3313_s0 = inlined_call_operand.vmem [shape: s32[21], index: 0, kind: input, shape index: {}]   ;;  %s3314_s2 = inlined_call_operand.hbm [shape: bf16[2688,128], index: 2, kind: input, shape index: {}]   ;;  %s3315_s3 = inlined_call_operand.vmem [shape: f32[2688,1], index: 3, kind: input, shape index: {}]   ;;  %s3316_s4 = inlined_call_operand.vmem [shape: bf16[13,128,256], index: 4, kind: input, shape index: {}]   ;;  %s3317_s5 = inlined_call_operand.hbm [shape: bf16[13,128,256], index: 5, kind: input, shape index: {}]   ;;  %s3318_s6 = inlined_call_operand.hbm [shape: bf16[13,256,128], index: 6, kind: input, shape index: {}]   ;;  %s3319_s7 = inlined_call_operand.hbm [shape: bf16[2688,128], index: 7, kind: output, shape index: {}]   ;;  %s3320_s1 = inlined_call_operand.vmem [shape: s32[21], index: 1, kind: input, shape index: {}]  }
   0x1   :  { %3348 = sst [smem:[#allocation39_spill]] %s3314_s2  ;;  %s13_s26 = sshll.u32 %s3313_s0, 4  ;;  %s14_s26 = int_to_ptr.vmem [resolvable:$true] %s13_s26 }
   0x2   :  { %3349 = sst [smem:[#allocation40_spill]] %s3315_s3  ;;  %s18_s29 = sshll.u32 %s3320_s1, 4  ;;  %s19_s29 = int_to_ptr.vmem [resolvable:$true] %s18_s29 }
   0x3   :  { %3350 = sst [smem:[#allocation41_spill]] %s3316_s4 }
   0x4   :  { %3351 = sst [smem:[#allocation42_spill]] %s3317_s5 }
   0x5   :  { %3352 = sst [smem:[#allocation43_spill]] %s3318_s6 }
   0x6   :  { %3353 = sst [smem:[#allocation44_spill]] %s3319_s7 }
   0x7   :  { %16 = dma.vmem_to_smem %s14_s26, 16, %s2473_s30, [#allocation3] }
   0x8   :  { %21 = dma.vmem_to_smem %s19_s29, 16, %s2474_s8, [#allocation3] }
   0x9   :  { %2391 = dma.done.wait [#allocation3], 32 }
   0xa   :  { %2392 = vsyncadd [#allocation3], 4294967264 }
   0xb   :  { %24 = sfence }
   0xc   :  { %25 = vsyncpa [#allocation7], 0 }
   0xd   :  { %27 = vsyncpa [#allocation7 + $0x1], 0 }
   0xe   :  { %28 = vsyncpa [#allocation11], 0 }
   0xf   :  { %30 = vsyncpa [#allocation11 + $0x1], 0 }
  0x10   :  { %31 = vsyncpa [#allocation8], 0 }
  0x11   :  { %33 = vsyncpa [#allocation8 + $0x1], 0  ;;  %s2528_s0 = smov 0   ;;  %s2530_s9 = smov 0  }
  0x12   :  { %s2532_s1 = smov 0   ;;  %s2534_s10 = smov 0  }
  0x13   :  { %s2536_s11 = smov 0   ;;  %s2538_s12 = smov 0  }
  0x14   :  { %s2540_s13 = smov 0   ;;  %s2542_s14 = smov 0  }
  0x15   :  { %s2544_s15 = smov 0   ;;  %s2546_s16 = smov 0  }
  0x16   :  { %s2548_s17 = smov 0   ;;  %s2550_s18 = smov 0  }
  0x17   :  { %s2552_s19 = smov 0   ;;  %s2554_s20 = smov 0  }
  0x18   :  { %s2556_s21 = smov 0   ;;  %s2558_s22 = smov 0  }
  0x19 LB: > { %3354 = sst [smem:[#allocation21_spill]] %s2419_s1  ;;  %s2609_s23 = sadd.s32 4294967295, %s2471_s22   ;;  %s2471_s22 = sphi %s2558_s22, %s39_s22   ;;  %s2467_s21 = sphi %s2556_s21, %s3449_s21   ;;  %s2463_s20 = sphi %s2554_s20, %s3455_s20   ;;  %s2459_s19 = sphi %s2552_s19, %s3447_s19   ;;  %s2455_s18 = sphi %s2550_s18, %s3454_s18   ;;  %s2451_s17 = sphi %s2548_s17, %s3446_s17   ;;  %s2447_s16 = sphi %s2546_s16, %s3453_s16   ;;  %s2443_s15 = sphi %s2544_s15, %s3452_s15   ;;  %s2439_s14 = sphi %s2542_s14, %s3444_s14   ;;  %s2435_s13 = sphi %s2540_s13, %s3443_s13   ;;  %s2431_s12 = sphi %s2538_s12, %s3442_s12   ;;  %s2427_s11 = sphi %s2536_s11, %s3441_s11   ;;  %s2423_s10 = sphi %s2534_s10, %s3440_s10   ;;  %s2419_s1 = sphi %s2532_s1, %s3439_s1   ;;  %s2415_s9 = sphi %s2530_s9, %s3451_s9   ;;  %s2411_s0 = sphi %s2528_s0, %s3450_s0  }
  0x1a   : > { %3355 = sst [smem:[#allocation22_spill]] %s2427_s11  ;;  %s48_s25 = sadd.s32 1, %s2463_s20 }
  0x1b   : > { %3356 = sst [smem:[#allocation23_spill]] %s2431_s12  ;;  %s51_s26 = sadd.s32 1, %s2467_s21 }
  0x1c   : > { %3357 = sst [smem:[#allocation24_spill]] %s2435_s13  ;;  %p49_p0 = scmp.ge.s32.totalorder %s48_s25, 2 }
  0x1d   : > { %3358 = sst [smem:[#allocation25_spill]] %s2439_s14  ;;  %s58_s27 = sadd.s32 1, %s2451_s17 }
  0x1e   : > { %3359 = sst [smem:[#allocation26_spill]] %s2451_s17  ;;  %p3332_p1 = scmp.ne.s32.totalorder %s2451_s17, %s2447_s16 }
  0x1f   : > { %3360 = sst [smem:[#allocation27_spill]] %s2455_s18  ;;  %p66_p2 = scmp.eq.s32.totalorder %s2471_s22, 0 }
  0x20   : > { %3361 = sst [smem:[#allocation28_spill]] %s2459_s19  ;;  %s3457_s25 = smov (%p49_p0, %s48_s25), 0 }
  0x21   : > { %3362 = sst [smem:[#allocation29_spill]] %s2467_s21  ;;  %s3459_s26 = smov (!%p49_p0, %s51_s26), %s2467_s21 }
  0x22   : > { %3363 = sst [smem:[#allocation30_spill]] %s3457_s25  ;;  %p2626_p3 = por %p66_p2, %p3332_p1 }
  0x23   : > { %p3329_p4 = scmp.ne.s32.totalorder %s2447_s16, %s2443_s15  ;;  %p53_p5 = scmp.ge.s32.totalorder %s3459_s26, 21 }
  0x24   : > { %p72_p6 = scmp.eq.s32.totalorder %s2609_s23, 0  ;;  %s107_s29 = sld [smem:[#allocation4 + %s2467_s21]] }
  0x25   : > { %s2636_s30 = ssub.s32 %s2463_s20, %s3457_s25  ;;  %s3461_s26 = smov (%p53_p5, %s3459_s26), 0 }
  0x26   : > { %3365 = sst [smem:[#allocation31_spill]] %s3461_s26  ;;  %p2645_p7 = por %p72_p6, %p3329_p4 }
  0x27   : > { %s114_s24 = sadd.s32 1, %s2439_s14  ;;  %s55_s7 = ssub.s32 %s2467_s21, %s3461_s26 }
  0x28   : > { %s3366_s8 = scalar_select %p2645_p7, 1, 0 }
  0x29   : > { %s108_s18 = sld [smem:[#allocation4 + %s3461_s26]]  ;;  %p56_p8 = scmp.eq.s32.totalorder %s55_s7, 0 }
  0x2a   : > { %3367 = sst [smem:[#allocation32_spill]] %s3366_s8  ;;  %p121_p9 = scmp.ne.s32.totalorder %s2439_s14, %s2435_s13 }
  0x2b   : > { %s137_s25 = sld [smem:[#allocation4 + %s2467_s21]]  ;;  %s144_s3 = sadd.s32 1, %s2431_s12 }
  0x2c   : > { %s2658_s19 = scalar_select %p56_p8, %s2451_s17, %s58_s27  }
  0x2d   : > { %p2662_p10 = por %p121_p9, %p66_p2  ;;  %s138_s6 = sld [smem:[#allocation4 + %s3461_s26]] }
  0x2e   : > { %3368 = sst [smem:[#allocation33_spill]] %s2658_s19  ;;  %p151_p11 = scmp.ne.s32.totalorder %s2431_s12, %s2427_s11 }
  0x2f   : > { %p157_p12 = scmp.ne.s32.totalorder %s2427_s11, %s2423_s10  ;;  %s109_s7 = ssub.s32 %s107_s29, %s108_s18 }
  0x30   : > { %s167_s13 = sld [smem:[#allocation4 + %s2467_s21]]  ;;  %s111_s5 = sor.u32 %s2636_s30, %s109_s7 }
  0x31   : > { %p2675_p13 = por %p151_p11, %p66_p2  ;;  %p112_p0 = scmp.eq.s32.totalorder %s111_s5, 0 }
  0x32   : > { %p2681_p5 = por %p157_p12, %p72_p6  ;;  %s168_s10 = sld [smem:[#allocation4 + %s3461_s26]] }
  0x33   : > { %s174_s18 = sadd.s32 1, %s2419_s1  ;;  %s139_s7 = ssub.s32 %s137_s25, %s138_s6 }
  0x34   : > { %s3371_s19 = scalar_select %p2681_p5, 1, 0 }
  0x35   : > { %s2688_s29 = scalar_select %p112_p0, %s2439_s14, %s114_s24  }
  0x36   : > { %3372 = sst [smem:[#allocation34_spill]] %s3371_s19  ;;  %p181_p8 = scmp.ne.s32.totalorder %s2419_s1, %s2415_s9 }
  0x37   : > { %3373 = sst [smem:[#allocation35_spill]] %s2688_s29  ;;  %s141_s11 = sor.u32 %s139_s7, %s2636_s30 }
  0x38   : > { %p187_p9 = scmp.ne.s32.totalorder %s2415_s9, %s2411_s0  ;;  %p142_p11 = scmp.eq.s32.totalorder %s141_s11, 0 }
  0x39   : > { %p2697_p4 = por %p181_p8, %p66_p2  ;;  %p211_p1 = scmp.eq.s32.totalorder %s2609_s23, 41 }
  0x3a   : > { %p2703_p12 = por %p187_p9, %p72_p6  ;;  %s169_s24 = ssub.s32 %s167_s13, %s168_s10 }
  0x3b   : > { %s3374_s5 = scalar_select %p2697_p4, 1, 0 }
  0x3c   : > { %s2709_s26 = scalar_select %p142_p11, %s2431_s12, %s144_s3  }
  0x3d   : > { %p3377_p0 = scmp.ne.s32.totalorder %s2451_s17, %s2447_s16  ;;  %s171_s0 = sor.u32 %s169_s24, %s2636_s30 }
  0x3e   : > { %3376 = sst [smem:[#allocation36_spill]] %s2709_s26  ;;  %s3379_s11 = sadd.s32 4294967294, %s2471_s22  }
  0x3f   : > { %p2714_p5 = por %p211_p1, %p3377_p0  ;;  %p217_p2 = scmp.eq.s32.totalorder %s3379_s11, 41 }
  0x40   : > { %p172_p8 = scmp.eq.s32.totalorder %s171_s0, 0  ;;  %p3380_p7 = scmp.ne.s32.totalorder %s2447_s16, %s2443_s15 }
  0x41   : > { %p1691_p6 = scmp.ge.s32.totalorder %s2471_s22, 42 }
  0x42   : > { %p2724_p4 = por %p217_p2, %p3380_p7  ;;  %s237_s3 = sand.u32 (!%p1691_p6), 1, %s2451_s17  }
  0x43   : > { %s2729_s7 = scalar_select %p172_p8, %s2419_s1, %s174_s18  }
  0x44   : > { %s3381_s25 = scalar_select %p2724_p4, 1, 0 }
  0x45   : > { %3383 = sst [smem:[#allocation38_spill]] %s2729_s7  ;;  %233 = sbr.rel (%p1691_p6) target bundleno = 156 (0x9c), region = 16 }
  0x46   : > { %3382 = sst [smem:[#allocation37_spill]] %s3381_s25  ;;  %s1865_s13 = sshll.u32 (!%p1691_p6), %s2467_s21, 6 }
  0x47   : > { %s1692_s10 = sshll.u32 (!%p1691_p6), %s237_s3, 6  ;;  %s3384_s2 = sld [smem:[#allocation39_spill]] (!%p1691_p6) }
  0x48   : > { %s241_s29 = scalar_lea.vmem (!%p1691_p6), [#allocation6], %s1692_s10  ;;  %s238_s18 = scalar_lea.sflag (!%p1691_p6), [#allocation7], %s237_s3 }
  0x49   : > { %s249_s26 = sshll.u32 (!%p1691_p6), %s241_s29, 4  ;;  %s3338_s7 = smov (!%p1691_p6), 64   ;;  %s250_s26 = int_to_ptr.vmem [resolvable:$true] %s249_s26 }
  0x4a   : > { %s3340_s25 = smov 4   ;;  %s269_s30 = sand.u32 (%p2662_p10), 1, %s2439_s14  }
  0x4b   : > { %267 = sbr.rel (!%p2662_p10) target bundleno = 104 (0x68), region = 28  ;;  %s1695_s10 = sshll.u32 (%p2662_p10), %s269_s30, 6 }
  0x4c   : > { %s3385_s4 = sld [smem:[#allocation41_spill]] (%p2662_p10) }
  0x4d   : > { %s246_s0 = scalar_lea.hbm %s3384_s2, %s1865_s13  ;;  %s272_s13 = sld [smem:[#allocation4 + %s2467_s21]] (%p2662_p10) }
  0x4e   : > { %s247_s11 = sshll.u32 %s246_s0, 4  ;;  %s248_s11 = int_to_ptr.hbm [resolvable:$true] %s247_s11 }
  0x4f   : > { %1970 = dma.hbm_to_vmem [thread:$0]  (%p2626_p3), %s248_s11, 1024, %s250_s26, %s238_s18, %s3338_s7, %s3338_s7, %s3340_s25  }
  0x50   : > { %s271_s26 = scalar_lea.vmem [#allocation9], %s1695_s10 }
  0x53   : > { %s1696_s29 = sshll.u32 %s272_s13, 5 }
  0x54   : > { %s274_s24 = sadd.s32 %s2463_s20, %s1696_s29 }
  0x55   : > { %s1697_s0 = sshll.u32 %s274_s24, 2 }
  0x56   : > { %s2750_s28 = scalar_lea.vmem %s3385_s4, %s1697_s0 }
  0x57   : > { %v293_v0 = vld [vmem:[%s2750_s28] sm:$0xf]  ;;  %v295_v1 = vld [vmem:[%s2750_s28 + $0x8] sm:$0xf]  ;;  %v297_v2 = vld [vmem:[%s2750_s28 + $0x10] sm:$0xf] }
  0x58   : > { %294 = vst [vmem:[%s271_s26] sm:$0xf] %v293_v0  ;;  %v299_v3 = vld [vmem:[%s2750_s28 + $0x18] sm:$0xf]  ;;  %v301_v4 = vld [vmem:[%s2750_s28 + $0x20] sm:$0xf] }
  0x59   : > { %296 = vst [vmem:[%s271_s26 + $0x4] sm:$0xf] %v295_v1  ;;  %v303_v5 = vld [vmem:[%s2750_s28 + $0x28] sm:$0xf]  ;;  %v305_v6 = vld [vmem:[%s2750_s28 + $0x30] sm:$0xf] }
  0x5a   : > { %298 = vst [vmem:[%s271_s26 + $0x8] sm:$0xf] %v297_v2  ;;  %v307_v7 = vld [vmem:[%s2750_s28 + $0x38] sm:$0xf]  ;;  %v309_v8 = vld [vmem:[%s2750_s28 + $0x40] sm:$0xf] }
  0x5b   : > { %300 = vst [vmem:[%s271_s26 + $0xc] sm:$0xf] %v299_v3  ;;  %v311_v9 = vld [vmem:[%s2750_s28 + $0x48] sm:$0xf]  ;;  %v313_v10 = vld [vmem:[%s2750_s28 + $0x50] sm:$0xf] }
  0x5c   : > { %302 = vst [vmem:[%s271_s26 + $0x10] sm:$0xf] %v301_v4  ;;  %v315_v11 = vld [vmem:[%s2750_s28 + $0x58] sm:$0xf]  ;;  %v317_v12 = vld [vmem:[%s2750_s28 + $0x60] sm:$0xf] }
  0x5d   : > { %304 = vst [vmem:[%s271_s26 + $0x14] sm:$0xf] %v303_v5  ;;  %v319_v13 = vld [vmem:[%s2750_s28 + $0x68] sm:$0xf]  ;;  %v321_v14 = vld [vmem:[%s2750_s28 + $0x70] sm:$0xf] }
  0x5e   : > { %306 = vst [vmem:[%s271_s26 + $0x18] sm:$0xf] %v305_v6  ;;  %v323_v15 = vld [vmem:[%s2750_s28 + $0x78] sm:$0xf] }
  0x5f   : > { %308 = vst [vmem:[%s271_s26 + $0x1c] sm:$0xf] %v307_v7 }
  0x60   : > { %310 = vst [vmem:[%s271_s26 + $0x20] sm:$0xf] %v309_v8 }
  0x61   : > { %312 = vst [vmem:[%s271_s26 + $0x24] sm:$0xf] %v311_v9 }
  0x62   : > { %314 = vst [vmem:[%s271_s26 + $0x28] sm:$0xf] %v313_v10 }
  0x63   : > { %316 = vst [vmem:[%s271_s26 + $0x2c] sm:$0xf] %v315_v11 }
  0x64   : > { %318 = vst [vmem:[%s271_s26 + $0x30] sm:$0xf] %v317_v12 }
  0x65   : > { %320 = vst [vmem:[%s271_s26 + $0x34] sm:$0xf] %v319_v13 }
  0x66   : > { %322 = vst [vmem:[%s271_s26 + $0x38] sm:$0xf] %v321_v14 }
  0x67   : > { %324 = vst [vmem:[%s271_s26 + $0x3c] sm:$0xf] %v323_v15 }
  0x68 PF: > { %s383_s2 = sand.u32 1, %s2431_s12   ;;  %s381_s30 = sand.u32 1, %s2471_s22  }
  0x69   : > { %s1971_s8 = scalar_select %p2675_p13, [#allocation4], [#allocation14] }
  0x6a   : > { %s1972_s11 = scalar_select %p2675_p13, %s2467_s21, 0 }
  0x6b   : > { %s1698_s18 = sshll.u32 %s383_s2, 6  ;;  %s407_s10 = sand.u32 1, %s2419_s1  }
  0x6c   : > { %s386_s13 = sld [smem:[%s1971_s8 + %s1972_s11]]  ;;  %p3386_p1 = scmp.ne.s32.totalorder %s3374_s5, 0 }
  0x6d   : > { %s385_s0 = scalar_lea.vmem [#allocation10], %s1698_s18  ;;  %s1701_s25 = sshll.u32 %s407_s10, 6 }
  0x6e   : > { %s1974_s29 = scalar_select %p3386_p1, [#allocation4], [#allocation15] }
  0x6f   : > { %s1975_s24 = scalar_select %p3386_p1, %s2467_s21, 0 }
  0x70   : > { %s2781_s3 = sshll.u32 %s385_s0, 4  ;;  %s3387_s8 = sld [smem:[#allocation42_spill]]  ;;  %s396_s3 = int_to_ptr.vmem [resolvable:$true] %s2781_s3 }
  0x71   : > { %s410_s26 = sld [smem:[%s1974_s29 + %s1975_s24]]  ;;  %s1702_s12 = sshll.u32 %s2463_s20, 4 }
  0x72   : > { %s1699_s28 = sshll.u32 %s386_s13, 5  ;;  %s2789_s1 = scalar_lea.sflag [#allocation11], %s381_s30 }
  0x73   : > { %s390_s7 = sadd.s32 %s2463_s20, %s1699_s28 }
  0x74   : > { %s1700_s4 = sshll.u32 %s390_s7, 2 }
  0x76   : > { %s392_s11 = scalar_lea.hbm %s3387_s8, %s1700_s4  ;;  %s2249_s7 = scalar_lea.hbm %s3387_s8, 1664 }
  0x77   : > { %s393_s14 = sshll.u32 %s392_s11, 4  ;;  %s394_s14 = int_to_ptr.hbm [resolvable:$true] %s393_s14 }
  0x78   : > { %s2243_s18 = sshra.s32 %s394_s14, 4  ;;  %s2244_s18 = int_to_ptr.hbm [resolvable:$true] %s2243_s18 }
  0x79   : > { %s2245_s0 = scalar_lea.hbm %s2244_s18, 64  ;;  %p2250_p9 = scmp.lt.s32.totalorder %s2244_s18, %s3387_s8 }
  0x7a   : > { %p2246_p3 = scmp.ne.s32.totalorder %s2244_s18, %s2245_s0  ;;  %p2251_p11 = scmp.lt.s32.totalorder %s2249_s7, %s2245_s0 }
  0x7c   : > { %p2247_p7 = pnand %p2246_p3, %p2675_p13  ;;  %p2252_p0 = por %p2251_p11, %p2250_p9 }
  0x7e   : > { %p2248_p10 = pneg %p2247_p7 }
  0x80   : > { %p2253_p2 = pnand %p2252_p0, %p2248_p10 }
  0x82   : > { %2256 = shalt.err (!%p2253_p2)
}
  0x83   : > { %s2477_s4 = smov 128   ;;  %s3388_s30 = smov 4  }
  0x84   : > { %s3389_s24 = smov 64   ;;  %s1703_s28 = sshll.u32 %s410_s26, 5 }
  0x85   : > { %1973 = dma.hbm_to_vmem [thread:$0]  (%p2675_p13), %s394_s14, 1024, %s396_s3, %s2789_s1, %s2477_s4, %s3389_s24, %s3388_s30  }
  0x86   : > { %s409_s2 = scalar_lea.vmem [#allocation12], %s1701_s25  ;;  %s415_s13 = sadd.s32 %s1703_s28, %s1702_s12 }
  0x87   : > { %s420_s11 = sshll.u32 %s409_s2, 4  ;;  %s1704_s10 = sshll.u32 %s415_s13, 2  ;;  %s421_s11 = int_to_ptr.vmem [resolvable:$true] %s420_s11 }
  0x88   : > { %s3390_s18 = sld [smem:[#allocation43_spill]] }
  0x8e   : > { %s3391_s8 = smov %s3390_s18  ;;  %s417_s0 = scalar_lea.hbm %s3390_s18, %s1704_s10 }
  0x8f   : > { %s418_s7 = sshll.u32 %s417_s0, 4  ;;  %s2277_s25 = scalar_lea.hbm %s3391_s8, 1664  ;;  %s419_s7 = int_to_ptr.hbm [resolvable:$true] %s418_s7 }
  0x90   : > { %s2271_s17 = sshra.s32 %s419_s7, 4  ;;  %s2272_s17 = int_to_ptr.hbm [resolvable:$true] %s2271_s17 }
  0x91   : > { %s2273_s27 = scalar_lea.hbm %s2272_s17, 64  ;;  %p2278_p13 = scmp.lt.s32.totalorder %s2272_s17, %s3391_s8 }
  0x92   : > { %p2274_p8 = scmp.ne.s32.totalorder %s2272_s17, %s2273_s27  ;;  %p2279_p7 = scmp.lt.s32.totalorder %s2277_s25, %s2273_s27 }
  0x94   : > { %p2275_p6 = pnand %p2274_p8, %p3386_p1  ;;  %p2280_p10 = por %p2279_p7, %p2278_p13 }
  0x96   : > { %p2276_p3 = pneg %p2275_p6 }
  0x98   : > { %p2281_p9 = pnand %p2280_p10, %p2276_p3 }
  0x9a   : > { %2284 = shalt.err (!%p2281_p9)
}
  0x9b   : > { %1976 = dma.hbm_to_vmem [thread:$0]  (%p3386_p1), %s419_s7, 1024, %s421_s11, %s2789_s1, %s3389_s24, %s3389_s24, %s3388_s30  }
  0x9c PF: > { %p1705_p11 = scmp.ge.s32.totalorder %s2471_s22, 1  ;;  %p428_p0 = scmp.lt.s32.totalorder %s2471_s22, 43 }
  0x9e   : > { %p429_p2 = pnand %p1705_p11, %p428_p0 }
  0x9f   : > { %s3392_s21 = sld [smem:[#allocation32_spill]] (!%p429_p2)  ;;  %s2824_s4 = sand.u32 (!%p429_p2), 1, %s2447_s16  }
  0xa0   : > { %432 = sbr.rel (%p429_p2) target bundleno = 858 (0x35a), region = 77  ;;  %s1706_s28 = sshll.u32 (!%p429_p2), %s2824_s4, 6 }
  0xa1   : > { %s435_s5 = scalar_lea.sflag (!%p429_p2), [#allocation7], %s2824_s4  ;;  %s2828_s2 = scalar_lea.vmem (!%p429_p2), [#allocation6], %s1706_s28 }
  0xa5   : > { %p3393_p8 = scmp.ne.s32.totalorder %s3392_s21, 0 }
  0xa7   : > { %2394 = dma.done.wait (%p3393_p8), %s435_s5, 1024  }
  0xa8   : > { %2396 = vsyncadd (%p3393_p8), %s435_s5, 4294966272  ;;  %s3394_s1 = sld [smem:[#allocation24_spill]]  ;;  %s451_s13 = sand.u32 1, %s2609_s23  }
  0xa9   : > { %s3395_s30 = sld [smem:[#allocation22_spill]]  ;;  %s452_s7 = scalar_lea.sflag [#allocation11], %s451_s13 }
  0xaa   : > { %s3396_s24 = sld [smem:[#allocation34_spill]] }
  0xae   : > { %s445_s11 = sand.u32 1, %s3394_s1  }
  0xaf   : > { %s1707_s10 = sshll.u32 %s445_s11, 6  ;;  %s453_s29 = sand.u32 1, %s3395_s30  }
  0xb0   : > { %s1708_s18 = sshll.u32 %s453_s29, 6  ;;  %s2837_s0 = scalar_lea.vmem [#allocation9], %s1707_s10 }
  0xb1   : > { %s2839_s17 = scalar_lea.vmem [#allocation10], %s1708_s18  ;;  %p3397_p1 = scmp.ne.s32.totalorder %s3396_s24, 0 }
  0xb3   : > { %2398 = dma.done.wait (%p3397_p1), %s452_s7, 1024  }
  0xb4   : > { %2400 = vsyncadd (%p3397_p1), %s452_s7, 4294966272  ;;  %s463_s27 = sand.u32 1, %s2415_s9  }
  0xb5   : > { %s1709_s14 = sshll.u32 %s463_s27, 6 }
  0xb6   : > { %s2846_s3 = scalar_lea.vmem [#allocation12], %s1709_s14 }
  0xb7   : > { %2402 = dma.done.wait (%p2703_p12), %s452_s7, 1024  }
  0xb8   : > { %2404 = vsyncadd (%p2703_p12), %s452_s7, 4294966272  ;;  %s3398_s23 = sld [smem:[#allocation28_spill]]  ;;  %s2858_s30 = scalar_lea.vmem [#allocation13], %s1706_s28 }
  0xb9   : > { %s3399_s5 = sld [smem:[#allocation40_spill]] }
  0xba   : > { %s3400_s24 = sld [smem:[#allocation27_spill]] }
  0xbe   : > { %s1711_s25 = sshll.u32 %s3398_s23, 4 }
  0xbf   : > { %p514_p6 = scmp.lt.s32.totalorder %s1711_s25, 335 }
  0xc0   : > { %p1713_p3 = scmp.ne.s32.totalorder %s3400_s24, 0 }
  0xc1   : > { %s3463_s25 = smov (!%p514_p6, %s1711_s25), 335 }
  0xc2   : > { %s1712_s12 = sshll.u32 %s3463_s25, 3  ;;  %527 = sbr.rel (%p1713_p3) target bundleno = 216 (0xd8), region = 97 }
  0xc3   : > { %s2856_s1 = scalar_lea.vmem %s3399_s5, %s1712_s12 }
  0xc7   : > { %v2478_v16 = vmov 0.0  }
  0xc8   : > { %528 = vst [vmem:[#allocation2 + $0x30] sm:$0xff] %v2478_v16 }
  0xc9   : > { %529 = vst [vmem:[#allocation2] sm:$0xff] %v2478_v16 }
  0xca   : > { %530 = vst [vmem:[#allocation2 + $0x58] sm:$0xff] %v2478_v16 }
  0xcb   : > { %531 = vst [vmem:[#allocation2 + $0x18] sm:$0xff] %v2478_v16 }
  0xcc   : > { %532 = vst [vmem:[#allocation2 + $0x50] sm:$0xff] %v2478_v16 }
  0xcd   : > { %533 = vst [vmem:[#allocation2 + $0x68] sm:$0xff] %v2478_v16 }
  0xce   : > { %534 = vst [vmem:[#allocation2 + $0x8] sm:$0xff] %v2478_v16 }
  0xcf   : > { %535 = vst [vmem:[#allocation2 + $0x48] sm:$0xff] %v2478_v16 }
  0xd0   : > { %536 = vst [vmem:[#allocation2 + $0x40] sm:$0xff] %v2478_v16 }
  0xd1   : > { %537 = vst [vmem:[#allocation2 + $0x20] sm:$0xff] %v2478_v16 }
  0xd2   : > { %538 = vst [vmem:[#allocation2 + $0x10] sm:$0xff] %v2478_v16 }
  0xd3   : > { %539 = vst [vmem:[#allocation2 + $0x38] sm:$0xff] %v2478_v16 }
  0xd4   : > { %540 = vst [vmem:[#allocation2 + $0x60] sm:$0xff] %v2478_v16 }
  0xd5   : > { %541 = vst [vmem:[#allocation2 + $0x70] sm:$0xff] %v2478_v16 }
  0xd6   : > { %542 = vst [vmem:[#allocation2 + $0x78] sm:$0xff] %v2478_v16 }
  0xd7   : > { %543 = vst [vmem:[#allocation2 + $0x28] sm:$0xff] %v2478_v16 }
  0xd8 PF: > { %s3401_s19 = sld [smem:[#allocation28_spill]] }
  0xde   : > { %s544_s28 = sld [smem:[#allocation5 + %s3401_s19]] }
  0xe4   : > { %p1714_p12 = scmp.eq.s32.totalorder %s544_s28, 0 }
  0xe6   : > { %548 = sbr.rel (%p1714_p12) target bundleno = 660 (0x294), region = 101 }
  0xeb   : > { %v1881_v17 = vld [vmem:[%s2837_s0 + $0x38] sm:$0xff]  ;;  %v1880_v18 = vld [vmem:[%s2837_s0 + $0x30] sm:$0xff]  ;;  %v1879_v21 = vld [vmem:[%s2837_s0 + $0x28] sm:$0xff] }
  0xec   : > { %677 = vmatpush.bf16.msra.mxu0 %v1881_v17  ;;  %1946 = vmatpush.bf16.msra.mxu3 %v1881_v17  ;;  %v1889_v19 = vld [vmem:[%s2839_s17 + $0x38] sm:$0xff]  ;;  %v1888_v20 = vld [vmem:[%s2839_s17 + $0x30] sm:$0xff]  ;;  %v1887_v22 = vld [vmem:[%s2839_s17 + $0x28] sm:$0xff] }
  0xed   : > { %790 = vmatpush.bf16.msra.mxu1 %v1889_v19  ;;  %v1878_v23 = vld [vmem:[%s2837_s0 + $0x20] sm:$0xff]  ;;  %v1877_v25 = vld [vmem:[%s2837_s0 + $0x18] sm:$0xff]  ;;  %v1876_v27 = vld [vmem:[%s2837_s0 + $0x10] sm:$0xff] }
  0xee   : > { %v1886_v24 = vld [vmem:[%s2839_s17 + $0x20] sm:$0xff]  ;;  %v1885_v26 = vld [vmem:[%s2839_s17 + $0x18] sm:$0xff]  ;;  %v1884_v28 = vld [vmem:[%s2839_s17 + $0x10] sm:$0xff] }
  0xef   : > { %v1875_v29 = vld [vmem:[%s2837_s0 + $0x8] sm:$0xff]  ;;  %v1874_v31 = vld [vmem:[%s2837_s0] sm:$0xff]  ;;  %v1872_v34 = vld [vmem:[%s2828_s2 + $0x30] sm:$0xff] }
  0xf0   : > { %678 = vmatpush.bf16.msra.mxu0 %v1880_v18  ;;  %1947 = vmatpush.bf16.msra.mxu3 %v1880_v18  ;;  %v1883_v30 = vld [vmem:[%s2839_s17 + $0x8] sm:$0xff]  ;;  %v1882_v32 = vld [vmem:[%s2839_s17] sm:$0xff]  ;;  %v1873_v36 = vld [vmem:[%s2828_s2 + $0x38] sm:$0xff] }
  0xf1   : > { %791 = vmatpush.bf16.msra.mxu1 %v1888_v20  ;;  %v1866_v33 = vld [vmem:[%s2828_s2] sm:$0xff]  ;;  %v1867_v35 = vld [vmem:[%s2828_s2 + $0x8] sm:$0xff]  ;;  %v1868_v37 = vld [vmem:[%s2828_s2 + $0x10] sm:$0xff] }
  0xf2   : > { %v1869_v38 = vld [vmem:[%s2828_s2 + $0x18] sm:$0xff]  ;;  %v1870_v39 = vld [vmem:[%s2828_s2 + $0x20] sm:$0xff]  ;;  %v1871_v40 = vld [vmem:[%s2828_s2 + $0x28] sm:$0xff] }
  0xf3   : > { %v1897_v41 = vld [vmem:[%s2846_s3 + $0x38] sm:$0xff]  ;;  %v1896_v42 = vld [vmem:[%s2846_s3 + $0x30] sm:$0xff]  ;;  %v1895_v43 = vld [vmem:[%s2846_s3 + $0x28] sm:$0xff] }
  0xf4   : > { %679 = vmatpush.bf16.msra.mxu0 %v1879_v21  ;;  %1948 = vmatpush.bf16.msra.mxu3 %v1879_v21  ;;  %v1894_v44 = vld [vmem:[%s2846_s3 + $0x20] sm:$0xff]  ;;  %v1893_v45 = vld [vmem:[%s2846_s3 + $0x18] sm:$0xff]  ;;  %v1892_v48 = vld [vmem:[%s2846_s3 + $0x10] sm:$0xff] }
  0xf5   : > { %792 = vmatpush.bf16.msra.mxu1 %v1887_v22  ;;  %1263 = vmatpush.bf16.msra.mxu2 %v1897_v41  ;;  %v1891_v50 = vld [vmem:[%s2846_s3 + $0x8] sm:$0xff]  ;;  %v1890_v56 = vld [vmem:[%s2846_s3] sm:$0xff] }
  0xf8   : > { %680 = vmatpush.bf16.msra.mxu0 %v1878_v23  ;;  %1949 = vmatpush.bf16.msra.mxu3 %v1878_v23 }
  0xf9   : > { %793 = vmatpush.bf16.msra.mxu1 %v1886_v24  ;;  %1264 = vmatpush.bf16.msra.mxu2 %v1896_v42 }
  0xfc   : > { %681 = vmatpush.bf16.msra.mxu0 %v1877_v25  ;;  %1950 = vmatpush.bf16.msra.mxu3 %v1877_v25 }
  0xfd   : > { %794 = vmatpush.bf16.msra.mxu1 %v1885_v26  ;;  %1265 = vmatpush.bf16.msra.mxu2 %v1895_v43 }
 0x100   : > { %682 = vmatpush.bf16.msra.mxu0 %v1876_v27  ;;  %1951 = vmatpush.bf16.msra.mxu3 %v1876_v27 }
 0x101   : > { %795 = vmatpush.bf16.msra.mxu1 %v1884_v28  ;;  %1266 = vmatpush.bf16.msra.mxu2 %v1894_v44 }
 0x104   : > { %683 = vmatpush.bf16.msra.mxu0 %v1875_v29  ;;  %1952 = vmatpush.bf16.msra.mxu3 %v1875_v29 }
 0x105   : > { %796 = vmatpush.bf16.msra.mxu1 %v1883_v30  ;;  %1267 = vmatpush.bf16.msra.mxu2 %v1893_v45 }
 0x108   : > { %684 = vmatpush.bf16.msra.mxu0 %v1874_v31  ;;  %1953 = vmatpush.bf16.msra.mxu3 %v1874_v31 }
 0x109   : > { %797 = vmatpush.bf16.msra.mxu1 %v1882_v32  ;;  %1268 = vmatpush.bf16.msra.mxu2 %v1892_v48 }
 0x10b   : > { %685 = vmatmul.bf16.vlgmr.msra.gmra.mxu0 %v1866_v33  ;;  %715 = vmatmul.bf16.vlgmr.msra.gmra.mxu3 %v1872_v34 }
 0x10c   : > { %1954 = vmatpush.bf16.msrb.mxu3 %v1889_v19  ;;  %798 = vmatmul.bf16.vlgmr.msra.gmra.mxu1 %v1866_v33 }
 0x10d   : > { %1269 = vmatpush.bf16.msra.mxu2 %v1891_v50 }
 0x110   : > { %1955 = vmatpush.bf16.msrb.mxu3 %v1888_v20 }
 0x111   : > { %1270 = vmatpush.bf16.msra.mxu2 %v1890_v56 }
 0x114   : > { %1956 = vmatpush.bf16.msrb.mxu3 %v1887_v22 }
 0x118   : > { %1957 = vmatpush.bf16.msrb.mxu3 %v1886_v24 }
 0x11b   : > { %690 = vmatmul.bf16.gmra.mxu0 %v1867_v35  ;;  %720 = vmatmul.bf16.gmra.mxu3 %v1873_v36 }
 0x11c   : > { %1958 = vmatpush.bf16.msrb.mxu3 %v1885_v26  ;;  %803 = vmatmul.bf16.gmra.mxu1 %v1867_v35 }
 0x120   : > { %1959 = vmatpush.bf16.msrb.mxu3 %v1884_v28 }
 0x124   : > { %1960 = vmatpush.bf16.msrb.mxu3 %v1883_v30 }
 0x128   : > { %1961 = vmatpush.bf16.msrb.mxu3 %v1882_v32 }
 0x12b   : > { %695 = vmatmul.bf16.gmra.mxu0 %v1868_v37  ;;  %828 = vmatmul.bf16.vlgmr.msrb.gmra.mxu3 %v1872_v34 }
 0x12c   : > { %808 = vmatmul.bf16.gmra.mxu1 %v1868_v37  ;;  %1962 = vmatpush.bf16.msra.mxu3 %v1897_v41 }
 0x130   : > { %1963 = vmatpush.bf16.msra.mxu3 %v1896_v42 }
 0x134   : > { %1964 = vmatpush.bf16.msra.mxu3 %v1895_v43 }
 0x138   : > { %1965 = vmatpush.bf16.msra.mxu3 %v1894_v44 }
 0x13b   : > { %700 = vmatmul.bf16.gmra.mxu0 %v1869_v38  ;;  %833 = vmatmul.bf16.gmra.mxu3 %v1873_v36 }
 0x13c   : > { %813 = vmatmul.bf16.gmra.mxu1 %v1869_v38  ;;  %1966 = vmatpush.bf16.msra.mxu3 %v1893_v45 }
 0x140   : > { %1967 = vmatpush.bf16.msra.mxu3 %v1892_v48 }
 0x144   : > { %1968 = vmatpush.bf16.msra.mxu3 %v1891_v50 }
 0x148   : > { %1969 = vmatpush.bf16.msra.mxu3 %v1890_v56 }
 0x14b   : > { %705 = vmatmul.bf16.gmra.mxu0 %v1870_v39 }
 0x14c   : > { %818 = vmatmul.bf16.gmra.mxu1 %v1870_v39 }
 0x15b   : > { %710 = vmatmul.bf16.gmra.mxu0 %v1871_v40 }
 0x15c   : > { %823 = vmatmul.bf16.gmra.mxu1 %v1871_v40 }
 0x188   : > { %v2891_v46 = vpop.f32.mrf.mxu0 }
 0x189   : > { %v1811_v47 = vmul.f32 -1.442695, %v2891_v46  ;;  %v2903_v57 = vpop.f32.mrf.mxu1 }
 0x18b   : > { %2124 = vpow2.f32 %v1811_v47 }
 0x18e   : > { %v2895_v49 = vpop.f32.mrf.mxu3 }
 0x18f   : > { %v1823_v51 = vmul.f32 -1.442695, %v2895_v49 }
 0x190   : > { %v2899_v52 = vpop.f32.mrf.mxu0 }
 0x191   : > { %v2125_v53 = vpop.eup %2124  ;;  %v1812_v54 = vmul.f32 -1.442695, %v2899_v52  ;;  %2126 = vpow2.f32 %v1823_v51  ;;  %v2917_v5 = vpop.f32.mrf.mxu1 }
 0x192   : > { %v887_v55 = vadd.f32 1.0, %v2125_v53 }
 0x193   : > { %2128 = vpow2.f32 %v1812_v54 }
 0x194   : > { %2130 = vrcp.f32 %v887_v55  ;;  %v912_v9 = vand.u32 2147483647, %v887_v55  ;;  %v914_v16 = vand.u32 2147483648, %v887_v55  ;;  %vm908_vm0 = vweird.f32 %v887_v55 }
 0x196   : > { %v2905_v58 = vpop.f32.mrf.mxu3  ;;  %vm2934_vm1 = vcmp.eq.f32.partialorder %v912_v9, 8.507059e+37  ;;  %v915_v25 = vor.u32 1.1754944e-38, %v914_v16 }
 0x197   : > { %v2127_v59 = vpop.eup %2126  ;;  %v1824_v60 = vmul.f32 -1.442695, %v2905_v58 }
 0x198   : > { %v2908_v61 = vpop.f32.mrf.mxu0  ;;  %v2910_v62 = vadd.f32 1.0, %v2127_v59 }
 0x199   : > { %v2129_v63 = vpop.eup %2128  ;;  %v1813_v0 = vmul.f32 -1.442695, %v2908_v61  ;;  %2132 = vpow2.f32 %v1824_v60  ;;  %v2956_v35 = vpop.f32.mrf.mxu1 }
 0x19a   : > { %v2913_v1 = vpop.eup %2130  ;;  %v888_v2 = vadd.f32 1.0, %v2129_v63  ;;  %2134 = vrcp.f32 %v2910_v62  ;;  %v1092_v27 = vand.u32 2147483647, %v2910_v62  ;;  %vm1088_vm4 = vweird.f32 %v2910_v62 }
 0x19b   : > { %v904_v3 = vmul.f32 %v2913_v1, %v887_v55  ;;  %2136 = vpow2.f32 %v1813_v0  ;;  %vm909_vm2 = vweird.f32 %v2913_v1  ;;  %v1094_v33 = vand.u32 2147483648, %v2910_v62 }
 0x19c   : > { %2138 = vrcp.f32 %v888_v2  ;;  %v927_v26 = vand.u32 2147483647, %v888_v2  ;;  %v929_v30 = vand.u32 2147483648, %v888_v2  ;;  %vm2949_vm5 = vmor %vm908_vm0, %vm909_vm2  ;;  %vm923_vm6 = vweird.f32 %v888_v2 }
 0x19d   : > { %v905_v4 = vsub.f32 1.0, %v904_v3  ;;  %vm2976_vm9 = vcmp.eq.f32.partialorder %v1092_v27, 8.507059e+37 }
 0x19e   : > { %v2919_v6 = vpop.f32.mrf.mxu3  ;;  %vm2972_vm8 = vcmp.eq.f32.partialorder %v927_v26, 8.507059e+37  ;;  %v930_v48 = vor.u32 1.1754944e-38, %v929_v30 }
 0x19f   : > { %v2133_v7 = vpop.eup %2132  ;;  %v906_v13 = vmul.f32 %v2913_v1, %v905_v4  ;;  %v1825_v21 = vmul.f32 -1.442695, %v2919_v6 }
 0x1a0   : > { %v2921_v8 = vpop.eup %2134  ;;  %v2923_v10 = vpop.f32.mrf.mxu0  ;;  %v2925_v11 = vadd.f32 1.0, %v2133_v7 }
 0x1a1   : > { %v2137_v12 = vpop.eup %2136  ;;  %v1084_v14 = vmul.f32 %v2921_v8, %v2910_v62  ;;  %v1814_v18 = vmul.f32 -1.442695, %v2923_v10  ;;  %v907_v22 = vadd.f32 %v2913_v1, %v906_v13  ;;  %vm1089_vm10 = vweird.f32 %v2921_v8 }
 0x1a2   : > { %v2139_v15 = vpop.eup %2138  ;;  %v2930_v17 = vadd.f32 1.0, %v2137_v12  ;;  %2140 = vrcp.f32 %v2925_v11  ;;  %vm1103_vm11 = vweird.f32 %v2925_v11  ;;  %vm2997_vm13 = vmor %vm1088_vm4, %vm1089_vm10  ;;  %v1109_v3 = vand.u32 2147483648, %v2925_v11 }
 0x1a3   : > { %v919_v19 = vmul.f32 %v2139_v15, %v888_v2  ;;  %v1085_v24 = vsub.f32 1.0, %v1084_v14  ;;  %vm924_vm3 = vweird.f32 %v2139_v15  ;;  %v911_v37 = vsel %vm2949_vm5, %v2913_v1, %v907_v22 }
 0x1a4   : > { %2142 = vrcp.f32 %v2930_v17  ;;  %vm2968_vm7 = vmor %vm923_vm6, %vm924_vm3  ;;  %v916_v53 = vsel %vm2934_vm1, %v915_v25, %v911_v37  ;;  %v1095_v1 = vor.u32 1.1754944e-38, %v1094_v33  ;;  %vm938_vm14 = vweird.f32 %v2930_v17 }
 0x1a5   : > { %v920_v23 = vsub.f32 1.0, %v919_v19  ;;  %2144 = vpow2.f32 %v1814_v18  ;;  %v1086_v39 = vmul.f32 %v2921_v8, %v1085_v24  ;;  %v1107_v9 = vand.u32 2147483647, %v2925_v11  ;;  %v3033_v24 = vpop.f32.mrf.mxu1 }
 0x1a6   : > { %v2943_v28 = vpop.f32.mrf.mxu3  ;;  %2146 = vpow2.f32 %v1825_v21  ;;  %v1143_v12 = vmul.f32 %v916_v53, %v2891_v46  ;;  %v942_v13 = vand.u32 2147483647, %v2930_v17  ;;  %v944_v46 = vand.u32 2147483648, %v2930_v17 }
 0x1a7   : > { %v921_v29 = vmul.f32 %v2139_v15, %v920_v23  ;;  %v1826_v36 = vmul.f32 -1.442695, %v2943_v28  ;;  %v1087_v56 = vadd.f32 %v2921_v8, %v1086_v39  ;;  %v1110_v23 = vor.u32 1.1754944e-38, %v1109_v3 }
 0x1a8   : > { %v2946_v31 = vpop.eup %2140  ;;  %v2954_v34 = vpop.f32.mrf.mxu0  ;;  %vm1108_vm1 = vcmp.eq.f32.partialorder %v1107_v9, 8.507059e+37  ;;  %vm3052_vm3 = vcmp.eq.f32.partialorder %v942_v13, 8.507059e+37  ;;  %v945_v37 = vor.u32 1.1754944e-38, %v944_v46  ;;  %v1159_v42 = vmul.f32 %v1143_v12, %v2903_v57 }
 0x1a9   : > { %v922_v38 = vadd.f32 %v2139_v15, %v921_v29  ;;  %v1099_v40 = vmul.f32 %v2946_v31, %v2925_v11  ;;  %v1815_v45 = vmul.f32 -1.442695, %v2954_v34  ;;  %2148 = vpow2.f32 %v1826_v36 }
 0x1aa   : > { %v2965_v41 = vpop.eup %2142  ;;  %vm1104_vm12 = vweird.f32 %v2946_v31  ;;  %v1091_v20 = vsel %vm2997_vm13, %v2921_v8, %v1087_v56 }
 0x1ab   : > { %v926_v47 = vsel %vm2968_vm7, %v2139_v15, %v922_v38  ;;  %v934_v50 = vmul.f32 %v2965_v41, %v2930_v17  ;;  %v2145_v51 = vpop.eup %2144  ;;  %v1100_v54 = vsub.f32 1.0, %v1099_v40  ;;  %2150 = vpow2.f32 %v1815_v45  ;;  %vm3016_vm15 = vmor %vm1103_vm11, %vm1104_vm12 }
 0x1ac   : > { %v2990_v59 = vadd.f32 1.0, %v2145_v51  ;;  %v2147_v60 = vpop.eup %2146  ;;  %v931_v63 = vsel %vm2972_vm8, %v930_v48, %v926_v47  ;;  %vm939_vm0 = vweird.f32 %v2965_v41  ;;  %v1096_v26 = vsel %vm2976_vm9, %v1095_v1, %v1091_v20 }
 0x1ad   : > { %v935_v55 = vsub.f32 1.0, %v934_v50  ;;  %v1101_v2 = vmul.f32 %v2946_v31, %v1100_v54  ;;  %v3020_v16 = vadd.f32 1.0, %v2147_v60  ;;  %v1144_v19 = vmul.f32 %v931_v63, %v2899_v52  ;;  %vm3048_vm2 = vmor %vm938_vm14, %vm939_vm0 }
 0x1ae   : > { %v3003_v4 = vpop.f32.mrf.mxu3  ;;  %2152 = vrcp.f32 %v2990_v59  ;;  %v957_v27 = vand.u32 2147483647, %v2990_v59  ;;  %v959_v29 = vand.u32 2147483648, %v2990_v59  ;;  %v1155_v40 = vmul.f32 %v1096_v26, %v2895_v49 }
 0x1af   : > { %v936_v7 = vmul.f32 %v2965_v41, %v935_v55  ;;  %v2149_v62 = vpop.eup %2148  ;;  %v1102_v14 = vadd.f32 %v2946_v31, %v1101_v2  ;;  %2154 = vrcp.f32 %v3020_v16  ;;  %v1160_v33 = vmul.f32 %v1144_v19, %v2917_v5  ;;  %v3091_v2 = vpop.f32.mrf.mxu1 }
 0x1b0   : > { %v3022_v18 = vpop.f32.mrf.mxu0  ;;  %v3040_v8 = vadd.f32 1.0, %v2149_v62  ;;  %vm953_vm4 = vweird.f32 %v2990_v59  ;;  %vm3068_vm5 = vcmp.eq.f32.partialorder %v957_v27, 8.507059e+37  ;;  %vm1118_vm6 = vweird.f32 %v3020_v16 }
 0x1b1   : > { %v1816_v21 = vmul.f32 -1.442695, %v3022_v18  ;;  %v2151_v22 = vpop.eup %2150  ;;  %v937_v11 = vadd.f32 %v2965_v41, %v936_v7  ;;  %v1106_v52 = vsel %vm3016_vm15, %v2946_v31, %v1102_v14  ;;  %v1191_v48 = vpack.c.bf16 %v1160_v33, %v1159_v42 }
 0x1b2   : > { %v3038_v25 = vadd.f32 1.0, %v2151_v22  ;;  %v1111_v17 = vsel %vm1108_vm1, %v1110_v23, %v1106_v52  ;;  %v1124_v53 = vand.u32 2147483648, %v3020_v16  ;;  %v1122_v60 = vand.u32 2147483647, %v3020_v16 }
 0x1b3   : > { %2156 = vpow2.f32 %v1816_v21  ;;  %v941_v36 = vsel %vm3048_vm2, %v2965_v41, %v937_v11  ;;  %v960_v41 = vor.u32 1.1754944e-38, %v959_v29  ;;  %v1156_v57 = vmul.f32 %v1111_v17, %v2905_v58  ;;  %1271 = vmatmul.bf16.vlgmr.msra.gmra.mxu2 %v1191_v48 }
 0x1b4   : > { %v2153_v30 = vpop.eup %2152  ;;  %2158 = vrcp.f32 %v3038_v25  ;;  %v946_v49 = vsel %vm3052_vm3, %v945_v37, %v941_v36  ;;  %v1171_v9 = vmul.f32 %v1155_v40, %v3003_v4  ;;  %v1125_v13 = vor.u32 1.1754944e-38, %v1124_v53 }
 0x1b5   : > { %v949_v38 = vmul.f32 %v2153_v30, %v2990_v59  ;;  %2160 = vrcp.f32 %v3040_v8  ;;  %v3066_v5 = vpop.eup %2154  ;;  %vm954_vm7 = vweird.f32 %v2153_v30  ;;  %v1145_v58 = vmul.f32 %v946_v49, %v2908_v61 }
 0x1b6   : > { %v831_v39 = vpop.f32.mrf.mxu3  ;;  %v1114_v47 = vmul.f32 %v3066_v5, %v3020_v16  ;;  %vm1119_vm8 = vweird.f32 %v3066_v5  ;;  %vm955_vm9 = vmor %vm953_vm4, %vm954_vm7  ;;  %v1139_v14 = vand.u32 2147483648, %v3040_v8  ;;  %vm1133_vm11 = vweird.f32 %v3040_v8 }
 0x1b7   : > { %v950_v43 = vsub.f32 1.0, %v949_v38  ;;  %v1172_v62 = vmul.f32 %v1156_v57, %v831_v39  ;;  %vm3103_vm10 = vmor %vm1118_vm6, %vm1119_vm8  ;;  %v1137_v21 = vand.u32 2147483647, %v3040_v8  ;;  %vm1123_vm13 = vcmp.eq.f32.partialorder %v1122_v60, 8.507059e+37  ;;  %v811_v42 = vpop.f32.mrf.mxu1 }
 0x1b8   : > { %v3073_v45 = vpop.f32.mrf.mxu0  ;;  %v1115_v56 = vsub.f32 1.0, %v1114_v47  ;;  %v1140_v29 = vor.u32 1.1754944e-38, %v1139_v14  ;;  %v974_v17 = vand.u32 2147483648, %v3038_v25  ;;  %v1161_v39 = vmul.f32 %v1145_v58, %v2956_v35 }
 0x1b9   : > { %v2157_v50 = vpop.eup %2156  ;;  %v951_v51 = vmul.f32 %v2153_v30, %v950_v43  ;;  %v1817_v54 = vmul.f32 -1.442695, %v3073_v45  ;;  %v1197_v52 = vpack.c.bf16 %v1172_v62, %v1171_v9  ;;  %vm1138_vm15 = vcmp.eq.f32.partialorder %v1137_v21, 8.507059e+37 }
 0x1ba   : > { %v3082_v55 = vpop.eup %2158  ;;  %v3086_v63 = vadd.f32 1.0, %v2157_v50  ;;  %v1116_v7 = vmul.f32 %v3066_v5, %v1115_v56  ;;  %vm968_vm2 = vweird.f32 %v3038_v25  ;;  %v975_v53 = vor.u32 1.1754944e-38, %v974_v17 }
 0x1bb   : > { %v952_v0 = vadd.f32 %v2153_v30, %v951_v51  ;;  %v964_v1 = vmul.f32 %v3082_v55, %v3038_v25  ;;  %2162 = vpow2.f32 %v1817_v54  ;;  %v2161_v3 = vpop.eup %2160  ;;  %1301 = vmatmul.bf16.vlgmr.msra.gmra.mxu3 %v1197_v52  ;;  %vm969_vm0 = vweird.f32 %v3082_v55 }
 0x1bc   : > { %2164 = vrcp.f32 %v3086_v63  ;;  %v1129_v59 = vmul.f32 %v2161_v3, %v3040_v8  ;;  %v1117_v46 = vadd.f32 %v3066_v5, %v1116_v7  ;;  %vm1134_vm12 = vweird.f32 %v2161_v3  ;;  %vm3150_vm3 = vmor %vm968_vm2, %vm969_vm0 }
 0x1bd   : > { %v956_v61 = vsel %vm955_vm9, %v2153_v30, %v952_v0  ;;  %v965_v4 = vsub.f32 1.0, %v964_v1  ;;  %vm3124_vm14 = vmor %vm1133_vm11, %vm1134_vm12  ;;  %v987_v35 = vand.u32 2147483647, %v3086_v63  ;;  %v972_v51 = vand.u32 2147483647, %v3038_v25 }
 0x1be   : > { %v834_v15 = vpop.f32.mrf.mxu3  ;;  %v961_v19 = vsel %vm3068_vm5, %v960_v41, %v956_v61  ;;  %v1130_v20 = vsub.f32 1.0, %v1129_v59  ;;  %v1121_v11 = vsel %vm3103_vm10, %v3066_v5, %v1117_v46  ;;  %vm983_vm4 = vweird.f32 %v3086_v63 }
 0x1bf   : > { %v1146_v16 = vmul.f32 %v961_v19, %v2923_v10  ;;  %v966_v10 = vmul.f32 %v3082_v55, %v965_v4  ;;  %v1126_v36 = vsel %vm1123_vm13, %v1125_v13, %v1121_v11  ;;  %vm988_vm6 = vcmp.eq.f32.partialorder %v987_v35, 8.507059e+37 }
 0x1c0   : > { %v3115_v22 = vpop.f32.mrf.mxu0  ;;  %v1131_v27 = vmul.f32 %v2161_v3, %v1130_v20  ;;  %v1157_v43 = vmul.f32 %v1126_v36, %v2919_v6  ;;  %vm973_vm7 = vcmp.eq.f32.partialorder %v972_v51, 8.507059e+37 }
 0x1c1   : > { %v1818_v23 = vmul.f32 -1.442695, %v3115_v22  ;;  %v2163_v26 = vpop.eup %2162  ;;  %v1162_v31 = vmul.f32 %v1146_v16, %v3033_v24  ;;  %v989_v24 = vand.u32 2147483648, %v3086_v63  ;;  %v967_v5 = vadd.f32 %v3082_v55, %v966_v10 }
 0x1c2   : > { %v2165_v30 = vpop.eup %2164  ;;  %v3129_v33 = vadd.f32 1.0, %v2163_v26  ;;  %v1132_v38 = vadd.f32 %v2161_v3, %v1131_v27  ;;  %v1173_v0 = vmul.f32 %v1157_v43, %v834_v15 }
 0x1c3   : > { %2166 = vpow2.f32 %v1818_v23  ;;  %v979_v37 = vmul.f32 %v2165_v30, %v3086_v63  ;;  %v1192_v41 = vpack.c.bf16 %v1162_v31, %v1161_v39  ;;  %vm984_vm1 = vweird.f32 %v2165_v30 }
 0x1c4   : > { %2168 = vrcp.f32 %v3129_v33  ;;  %v1136_v40 = vsel %vm3124_vm14, %v2161_v3, %v1132_v38  ;;  %v971_v25 = vsel %vm3150_vm3, %v3082_v55, %v967_v5  ;;  %vm985_vm5 = vmor %vm983_vm4, %vm984_vm1  ;;  %v814_v55 = vpop.f32.mrf.mxu1  ;;  %vm998_vm10 = vweird.f32 %v3129_v33 }
 0x1c5   : > { %v980_v8 = vsub.f32 1.0, %v979_v37  ;;  %v1141_v44 = vsel %vm1138_vm15, %v1140_v29, %v1136_v40  ;;  %1276 = vmatmul.bf16.gmra.mxu2 %v1192_v41  ;;  %v976_v9 = vsel %vm973_vm7, %v975_v53, %v971_v25  ;;  %v1004_v27 = vand.u32 2147483648, %v3129_v33 }
 0x1c6   : > { %v1158_v57 = vmul.f32 %v1141_v44, %v2943_v28  ;;  %v836_v48 = vpop.f32.mrf.mxu3  ;;  %v990_v28 = vor.u32 1.1754944e-38, %v989_v24  ;;  %v1147_v14 = vmul.f32 %v976_v9, %v2954_v34 }
 0x1c7   : > { %v981_v49 = vmul.f32 %v2165_v30, %v980_v8 }
 0x1c8   : > { %v3143_v47 = vpop.f32.mrf.mxu0  ;;  %v1174_v1 = vmul.f32 %v1158_v57, %v836_v48 }
 0x1c9   : > { %v2167_v50 = vpop.eup %2166  ;;  %v1819_v54 = vmul.f32 -1.442695, %v3143_v47  ;;  %v982_v56 = vadd.f32 %v2165_v30, %v981_v49 }
 0x1ca   : > { %v894_v60 = vadd.f32 1.0, %v2167_v50  ;;  %v3155_v58 = vpop.eup %2168  ;;  %v1198_v12 = vpack.c.bf16 %v1174_v1, %v1173_v0  ;;  %v1179_v1 = vld [vmem:[#allocation2 + $0x50] sm:$0xff] }
 0x1cb   : > { %2170 = vpow2.f32 %v1819_v54  ;;  %v986_v3 = vsel %vm985_vm5, %v2165_v30, %v982_v56  ;;  %v994_v7 = vmul.f32 %v3155_v58, %v3129_v33  ;;  %vm999_vm8 = vweird.f32 %v3155_v58 }
 0x1cc   : > { %2172 = vrcp.f32 %v894_v60  ;;  %v991_v63 = vsel %vm988_vm6, %v990_v28, %v986_v3  ;;  %1306 = vmatmul.bf16.gmra.mxu3 %v1198_v12  ;;  %v1017_v11 = vand.u32 2147483647, %v894_v60  ;;  %v1019_v34 = vand.u32 2147483648, %v894_v60  ;;  %vm3179_vm11 = vmor %vm998_vm10, %vm999_vm8  ;;  %v816_v17 = vpop.f32.mrf.mxu1 }
 0x1cd   : > { %v1148_v62 = vmul.f32 %v991_v63, %v3022_v18  ;;  %v995_v61 = vsub.f32 1.0, %v994_v7  ;;  %v1163_v18 = vmul.f32 %v1147_v14, %v3091_v2  ;;  %v1002_v2 = vand.u32 2147483647, %v3129_v33 }
 0x1ce   : > { %vm1013_vm12 = vweird.f32 %v894_v60  ;;  %vm1018_vm14 = vcmp.eq.f32.partialorder %v1017_v11, 8.507059e+37  ;;  %v1020_v37 = vor.u32 1.1754944e-38, %v1019_v34  ;;  %v1005_v33 = vor.u32 1.1754944e-38, %v1004_v27 }
 0x1cf   : > { %v996_v46 = vmul.f32 %v3155_v58, %v995_v61  ;;  %v1164_v20 = vmul.f32 %v1148_v62, %v811_v42  ;;  %vm1003_vm15 = vcmp.eq.f32.partialorder %v1002_v2, 8.507059e+37 }
 0x1d0   : > { %v3164_v13 = vpop.f32.mrf.mxu0 }
 0x1d1   : > { %v2171_v59 = vpop.eup %2170  ;;  %v1820_v15 = vmul.f32 -1.442695, %v3164_v13  ;;  %v997_v23 = vadd.f32 %v3155_v58, %v996_v46  ;;  %v1193_v26 = vpack.c.bf16 %v1164_v20, %v1163_v18 }
 0x1d2   : > { %v2173_v19 = vpop.eup %2172  ;;  %v3168_v4 = vadd.f32 1.0, %v2171_v59 }
 0x1d3   : > { %v1009_v16 = vmul.f32 %v2173_v19, %v894_v60  ;;  %2174 = vpow2.f32 %v1820_v15  ;;  %vm1014_vm9 = vweird.f32 %v2173_v19  ;;  %v1001_v39 = vsel %vm3179_vm11, %v3155_v58, %v997_v23 }
 0x1d4   : > { %2176 = vrcp.f32 %v3168_v4  ;;  %vm1015_vm13 = vmor %vm1013_vm12, %vm1014_vm9  ;;  %v1006_v42 = vsel %vm1003_vm15, %v1005_v33, %v1001_v39  ;;  %v819_v54 = vpop.f32.mrf.mxu1  ;;  %vm1028_vm2 = vweird.f32 %v3168_v4  ;;  %v1034_v25 = vand.u32 2147483648, %v3168_v4 }
 0x1d5   : > { %v1010_v21 = vsub.f32 1.0, %v1009_v16  ;;  %1281 = vmatmul.bf16.gmra.mxu2 %v1193_v26  ;;  %v1149_v49 = vmul.f32 %v1006_v42, %v3073_v45  ;;  %v1032_v3 = vand.u32 2147483647, %v3168_v4 }
 0x1d6   : > { %v1035_v59 = vor.u32 1.1754944e-38, %v1034_v25 }
 0x1d7   : > { %v1011_v52 = vmul.f32 %v2173_v19, %v1010_v21  ;;  %v1165_v6 = vmul.f32 %v1149_v49, %v814_v55  ;;  %vm1033_vm7 = vcmp.eq.f32.partialorder %v1032_v3, 8.507059e+37  ;;  %v1190_v3 = vld [vmem:[#allocation2 + $0x28] sm:$0xff] }
 0x1d8   : > { %v3177_v29 = vpop.f32.mrf.mxu0 }
 0x1d9   : > { %v2175_v30 = vpop.eup %2174  ;;  %v1012_v32 = vadd.f32 %v2173_v19, %v1011_v52  ;;  %v1821_v31 = vmul.f32 -1.442695, %v3177_v29 }
 0x1da   : > { %v2177_v36 = vpop.eup %2176  ;;  %v896_v38 = vadd.f32 1.0, %v2175_v30 }
 0x1db   : > { %v1016_v8 = vsel %vm1015_vm13, %v2173_v19, %v1012_v32  ;;  %v1024_v24 = vmul.f32 %v2177_v36, %v3168_v4  ;;  %2178 = vpow2.f32 %v1821_v31  ;;  %vm1029_vm0 = vweird.f32 %v2177_v36 }
 0x1dc   : > { %v1021_v40 = vsel %vm1018_vm14, %v1020_v37, %v1016_v8  ;;  %2180 = vrcp.f32 %v896_v38  ;;  %v1047_v56 = vand.u32 2147483647, %v896_v38  ;;  %v1049_v28 = vand.u32 2147483648, %v896_v38  ;;  %vm3199_vm3 = vmor %vm1028_vm2, %vm1029_vm0  ;;  %v821_v19 = vpop.f32.mrf.mxu1 }
 0x1dd   : > { %v1150_v5 = vmul.f32 %v1021_v40, %v3115_v22  ;;  %v1025_v43 = vsub.f32 1.0, %v1024_v24  ;;  %vm1043_vm4 = vweird.f32 %v896_v38 }
 0x1de   : > { %v1050_v9 = vor.u32 1.1754944e-38, %v1049_v28  ;;  %vm1048_vm6 = vcmp.eq.f32.partialorder %v1047_v56, 8.507059e+37  ;;  %v1178_v28 = vld [vmem:[#allocation2 + $0x18] sm:$0xff] }
 0x1df   : > { %v1026_v50 = vmul.f32 %v2177_v36, %v1025_v43  ;;  %v1166_v53 = vmul.f32 %v1150_v5, %v816_v17  ;;  %v1175_v43 = vld [vmem:[#allocation2 + $0x30] sm:$0xff] }
 0x1e0   : > { %v3190_v44 = vpop.f32.mrf.mxu0 }
 0x1e1   : > { %v2179_v41 = vpop.eup %2178  ;;  %v1822_v35 = vmul.f32 -1.442695, %v3190_v44  ;;  %v1027_v60 = vadd.f32 %v2177_v36, %v1026_v50  ;;  %v1194_v45 = vpack.c.bf16 %v1166_v53, %v1165_v6 }
 0x1e2   : > { %v2181_v57 = vpop.eup %2180  ;;  %v3194_v48 = vadd.f32 1.0, %v2179_v41 }
 0x1e3   : > { %v1039_v51 = vmul.f32 %v2181_v57, %v896_v38  ;;  %2182 = vpow2.f32 %v1822_v35  ;;  %vm1044_vm1 = vweird.f32 %v2181_v57  ;;  %v1031_v61 = vsel %vm3199_vm3, %v2177_v36, %v1027_v60  ;;  %v1176_v35 = vld [vmem:[#allocation2] sm:$0xff]  ;;  %v1189_v60 = vld [vmem:[#allocation2 + $0x78] sm:$0xff] }
 0x1e4   : > { %2184 = vrcp.f32 %v3194_v48  ;;  %vm1045_vm5 = vmor %vm1043_vm4, %vm1044_vm1  ;;  %v1036_v15 = vsel %vm1033_vm7, %v1035_v59, %v1031_v61  ;;  %vm1058_vm10 = vweird.f32 %v3194_v48  ;;  %v824_v2 = vpop.f32.mrf.mxu1  ;;  %v1180_v61 = vld [vmem:[#allocation2 + $0x68] sm:$0xff] }
 0x1e5   : > { %v1040_v22 = vsub.f32 1.0, %v1039_v51  ;;  %1286 = vmatmul.bf16.gmra.mxu2 %v1194_v45  ;;  %v1151_v16 = vmul.f32 %v1036_v15, %v3143_v47  ;;  %v1062_v47 = vand.u32 2147483647, %v3194_v48  ;;  %v1181_v59 = vld [vmem:[#allocation2 + $0x8] sm:$0xff] }
 0x1e7   : > { %v1041_v58 = vmul.f32 %v2181_v57, %v1040_v22  ;;  %v1167_v34 = vmul.f32 %v1151_v16, %v819_v54  ;;  %vm1063_vm15 = vcmp.eq.f32.partialorder %v1062_v47, 8.507059e+37  ;;  %v1188_v54 = vld [vmem:[#allocation2 + $0x70] sm:$0xff]  ;;  %v1183_v16 = vld [vmem:[#allocation2 + $0x40] sm:$0xff] }
 0x1e9   : > { %v2183_v0 = vpop.eup %2182  ;;  %v1042_v7 = vadd.f32 %v2181_v57, %v1041_v58 }
 0x1ea   : > { %v2185_v63 = vpop.eup %2184  ;;  %v898_v62 = vadd.f32 1.0, %v2183_v0 }
 0x1eb   : > { %v1046_v12 = vsel %vm1045_vm5, %v2181_v57, %v1042_v7  ;;  %v1054_v55 = vmul.f32 %v2185_v63, %v3194_v48  ;;  %vm1059_vm8 = vweird.f32 %v2185_v63  ;;  %v1187_v57 = vld [vmem:[#allocation2 + $0x60] sm:$0xff] }
 0x1ec   : > { %v1051_v14 = vsel %vm1048_vm6, %v1050_v9, %v1046_v12  ;;  %2186 = vrcp.f32 %v898_v62  ;;  %v1077_v52 = vand.u32 2147483647, %v898_v62  ;;  %v1079_v26 = vand.u32 2147483648, %v898_v62  ;;  %vm1060_vm11 = vmor %vm1058_vm10, %vm1059_vm8  ;;  %v826_v33 = vpop.f32.mrf.mxu1 }
 0x1ed   : > { %v1152_v4 = vmul.f32 %v1051_v14, %v3164_v13  ;;  %v1055_v46 = vsub.f32 1.0, %v1054_v55  ;;  %v1064_v13 = vand.u32 2147483648, %v3194_v48  ;;  %vm1073_vm12 = vweird.f32 %v898_v62 }
 0x1ee   : > { %v1080_v31 = vor.u32 1.1754944e-38, %v1079_v26  ;;  %vm1078_vm14 = vcmp.eq.f32.partialorder %v1077_v52, 8.507059e+37 }
 0x1ef   : > { %v1056_v18 = vmul.f32 %v2185_v63, %v1055_v46  ;;  %v1168_v11 = vmul.f32 %v1152_v4, %v821_v19  ;;  %v1065_v38 = vor.u32 1.1754944e-38, %v1064_v13  ;;  %v1182_v19 = vld [vmem:[#allocation2 + $0x48] sm:$0xff] }
 0x1f1   : > { %v1057_v27 = vadd.f32 %v2185_v63, %v1056_v18  ;;  %v1195_v10 = vpack.c.bf16 %v1168_v11, %v1167_v34 }
 0x1f2   : > { %v2187_v20 = vpop.eup %2186 }
 0x1f3   : > { %v1069_v21 = vmul.f32 %v2187_v20, %v898_v62  ;;  %vm1074_vm9 = vweird.f32 %v2187_v20  ;;  %v1061_v36 = vsel %vm1060_vm11, %v2185_v63, %v1057_v27  ;;  %v1186_v27 = vld [vmem:[#allocation2 + $0x38] sm:$0xff] }
 0x1f4   : > { %vm1075_vm13 = vmor %vm1073_vm12, %vm1074_vm9  ;;  %v1066_v39 = vsel %vm1063_vm15, %v1065_v38, %v1061_v36 }
 0x1f5   : > { %v1070_v23 = vsub.f32 1.0, %v1069_v21  ;;  %1291 = vmatmul.bf16.gmra.mxu2 %v1195_v10  ;;  %v1153_v24 = vmul.f32 %v1066_v39, %v3177_v29  ;;  %v1184_v21 = vld [vmem:[#allocation2 + $0x20] sm:$0xff] }
 0x1f7   : > { %v1071_v30 = vmul.f32 %v2187_v20, %v1070_v23  ;;  %v1169_v42 = vmul.f32 %v1153_v24, %v824_v2  ;;  %v1185_v23 = vld [vmem:[#allocation2 + $0x10] sm:$0xff] }
 0x1f9   : > { %v1072_v32 = vadd.f32 %v2187_v20, %v1071_v30 }
 0x1fb   : > { %v1076_v37 = vsel %vm1075_vm13, %v2187_v20, %v1072_v32 }
 0x1fc   : > { %v1081_v17 = vsel %vm1078_vm14, %v1080_v31, %v1076_v37 }
 0x1fd   : > { %v1154_v8 = vmul.f32 %v1081_v17, %v3190_v44  ;;  %v1177_v44 = vld [vmem:[#allocation2 + $0x58] sm:$0xff] }
 0x1ff   : > { %v1170_v40 = vmul.f32 %v1154_v8, %v826_v33 }
 0x201   : > { %v1196_v5 = vpack.c.bf16 %v1170_v40, %v1169_v42 }
 0x205   : > { %1296 = vmatmul.bf16.gmra.mxu2 %v1196_v5 }
 0x236   : > { %v1272_v41 = vpop.f32.mrf.mxu2 }
 0x237   : > { %v1312_v49 = vadd.f32 %v1272_v41, %v1175_v43 }
 0x239   : > { %1328 = vst [vmem:[#allocation2 + $0x30] sm:$0xff] %v1312_v49 }
 0x23e   : > { %v1274_v48 = vpop.f32.mrf.mxu2  ;;  %v1302_v50 = vpop.f32.mrf.mxu3 }
 0x23f   : > { %v1313_v51 = vadd.f32 %v1274_v48, %v1176_v35  ;;  %v1324_v53 = vadd.f32 %v1302_v50, %v1187_v57 }
 0x241   : > { %1329 = vst [vmem:[#allocation2] sm:$0xff] %v1313_v51 }
 0x242   : > { %1340 = vst [vmem:[#allocation2 + $0x60] sm:$0xff] %v1324_v53 }
 0x246   : > { %v1304_v6 = vpop.f32.mrf.mxu3 }
 0x247   : > { %v1325_v56 = vadd.f32 %v1304_v6, %v1188_v54 }
 0x248   : > { %v1277_v29 = vpop.f32.mrf.mxu2 }
 0x249   : > { %v1314_v22 = vadd.f32 %v1277_v29, %v1177_v44  ;;  %1341 = vst [vmem:[#allocation2 + $0x70] sm:$0xff] %v1325_v56 }
 0x24b   : > { %1330 = vst [vmem:[#allocation2 + $0x58] sm:$0xff] %v1314_v22 }
 0x24f   : > { %v1307_v45 = vpop.f32.mrf.mxu3 }
 0x250   : > { %v1279_v58 = vpop.f32.mrf.mxu2  ;;  %v1326_v0 = vadd.f32 %v1307_v45, %v1189_v60 }
 0x251   : > { %v1315_v25 = vadd.f32 %v1279_v58, %v1178_v28 }
 0x252   : > { %1342 = vst [vmem:[#allocation2 + $0x78] sm:$0xff] %v1326_v0 }
 0x253   : > { %1331 = vst [vmem:[#allocation2 + $0x18] sm:$0xff] %v1315_v25 }
 0x257   : > { %v1309_v63 = vpop.f32.mrf.mxu3 }
 0x258   : > { %v1282_v7 = vpop.f32.mrf.mxu2  ;;  %v1327_v62 = vadd.f32 %v1309_v63, %v1190_v3 }
 0x259   : > { %v1316_v9 = vadd.f32 %v1282_v7, %v1179_v1 }
 0x25a   : > { %1343 = vst [vmem:[#allocation2 + $0x28] sm:$0xff] %v1327_v62 }
 0x25b   : > { %1332 = vst [vmem:[#allocation2 + $0x50] sm:$0xff] %v1316_v9 }
 0x260   : > { %v1284_v12 = vpop.f32.mrf.mxu2 }
 0x261   : > { %v1317_v55 = vadd.f32 %v1284_v12, %v1180_v61 }
 0x263   : > { %1333 = vst [vmem:[#allocation2 + $0x68] sm:$0xff] %v1317_v55 }
 0x268   : > { %v1287_v14 = vpop.f32.mrf.mxu2 }
 0x269   : > { %v1318_v15 = vadd.f32 %v1287_v14, %v1181_v59 }
 0x26b   : > { %1334 = vst [vmem:[#allocation2 + $0x8] sm:$0xff] %v1318_v15 }
 0x270   : > { %v1289_v4 = vpop.f32.mrf.mxu2 }
 0x271   : > { %v1319_v46 = vadd.f32 %v1289_v4, %v1182_v19 }
 0x273   : > { %1335 = vst [vmem:[#allocation2 + $0x48] sm:$0xff] %v1319_v46 }
 0x278   : > { %v1292_v20 = vpop.f32.mrf.mxu2 }
 0x279   : > { %v1320_v18 = vadd.f32 %v1292_v20, %v1183_v16 }
 0x27b   : > { %1336 = vst [vmem:[#allocation2 + $0x40] sm:$0xff] %v1320_v18 }
 0x280   : > { %v1294_v11 = vpop.f32.mrf.mxu2 }
 0x281   : > { %v1321_v34 = vadd.f32 %v1294_v11, %v1184_v21 }
 0x283   : > { %1337 = vst [vmem:[#allocation2 + $0x20] sm:$0xff] %v1321_v34 }
 0x288   : > { %v1297_v52 = vpop.f32.mrf.mxu2 }
 0x289   : > { %v1322_v26 = vadd.f32 %v1297_v52, %v1185_v23 }
 0x28b   : > { %1338 = vst [vmem:[#allocation2 + $0x10] sm:$0xff] %v1322_v26 }
 0x290   : > { %v1299_v30 = vpop.f32.mrf.mxu2 }
 0x291   : > { %v1323_v10 = vadd.f32 %v1299_v30, %v1186_v27 }
 0x293   : > { %1339 = vst [vmem:[#allocation2 + $0x38] sm:$0xff] %v1323_v10 }
 0x294 PF: > { %s3432_s2 = sld [smem:[#allocation27_spill]] }
 0x29a   : > { %p1859_p13 = scmp.ne.s32.totalorder %s3432_s2, 1 }
 0x29c   : > { %1347 = sbr.rel (%p1859_p13) target bundleno = 836 (0x344), region = 105 }
 0x2a1   : > { %v1352_v13 = vld [vmem:[%s2856_s1 + $0x20] sm:$0xff]  ;;  %v1350_v2 = vld [vmem:[%s2856_s1 + $0x10] sm:$0xff]  ;;  %v2479_v32 = vmov 0   ;;  %v1353_v31 = vld [vmem:[%s2856_s1 + $0x28] sm:$0xff] }
 0x2a2   : > { %v1348_v47 = vld [vmem:[%s2856_s1] sm:$0xff]  ;;  %2190 = vset.pattern.permute.xlu2 %v2479_v32  ;;  %2189 = vset.pattern.permute.xlu1 %v2479_v32  ;;  %v1351_v36 = vld [vmem:[%s2856_s1 + $0x18] sm:$0xff]  ;;  %v1349_v37 = vld [vmem:[%s2856_s1 + $0x8] sm:$0xff] }
 0x2a3   : > { %2188 = vset.pattern.permute.xlu0 %v2479_v32  ;;  %1402 = vperm.xlu2 %2190, %v1352_v13   ;;  %v1356_v38 = vld [vmem:[%s2856_s1 + $0x40] sm:$0xff]  ;;  %v1355_v17 = vld [vmem:[%s2856_s1 + $0x38] sm:$0xff]  ;;  %v1354_v39 = vld [vmem:[%s2856_s1 + $0x30] sm:$0xff] }
 0x2a4   : > { %1392 = vperm.xlu1 %2189, %v1350_v2   ;;  %1382 = vperm.xlu0 %2188, %v1348_v47   ;;  %v1359_v8 = vld [vmem:[%s2856_s1 + $0x58] sm:$0xff]  ;;  %v1358_v24 = vld [vmem:[%s2856_s1 + $0x50] sm:$0xff]  ;;  %v1357_v33 = vld [vmem:[%s2856_s1 + $0x48] sm:$0xff] }
 0x2a5   : > { %v1362_v40 = vld [vmem:[%s2856_s1 + $0x70] sm:$0xff]  ;;  %v1361_v42 = vld [vmem:[%s2856_s1 + $0x68] sm:$0xff]  ;;  %v1360_v5 = vld [vmem:[%s2856_s1 + $0x60] sm:$0xff] }
 0x2a6   : > { %v1363_v43 = vld [vmem:[%s2856_s1 + $0x78] sm:$0xff]  ;;  %v1368_v49 = vld [vmem:[#allocation2 + $0x50] sm:$0xff]  ;;  %v1369_v35 = vld [vmem:[#allocation2 + $0x68] sm:$0xff] }
 0x2a7   : > { %v1366_v54 = vld [vmem:[#allocation2 + $0x58] sm:$0xff]  ;;  %v1364_v29 = vld [vmem:[#allocation2 + $0x30] sm:$0xff]  ;;  %v1365_v22 = vld [vmem:[#allocation2] sm:$0xff] }
 0x2a8   : > { %v1367_v6 = vld [vmem:[#allocation2 + $0x18] sm:$0xff]  ;;  %v1371_v7 = vld [vmem:[#allocation2 + $0x48] sm:$0xff]  ;;  %v1372_v59 = vld [vmem:[#allocation2 + $0x40] sm:$0xff] }
 0x2a9   : > { %v1370_v63 = vld [vmem:[#allocation2 + $0x8] sm:$0xff]  ;;  %v1375_v14 = vld [vmem:[#allocation2 + $0x38] sm:$0xff]  ;;  %v1374_v15 = vld [vmem:[#allocation2 + $0x10] sm:$0xff] }
 0x2aa   : > { %v1373_v19 = vld [vmem:[#allocation2 + $0x20] sm:$0xff]  ;;  %v1377_v52 = vld [vmem:[#allocation2 + $0x70] sm:$0xff]  ;;  %v1378_v47 = vld [vmem:[#allocation2 + $0x78] sm:$0xff] }
 0x2ab   : > { %1407 = vperm.xlu2 %2190, %v1353_v31   ;;  %v1376_v26 = vld [vmem:[#allocation2 + $0x60] sm:$0xff]  ;;  %v1379_v31 = vld [vmem:[#allocation2 + $0x28] sm:$0xff] }
 0x2ac   : > { %1397 = vperm.xlu1 %2189, %v1351_v36   ;;  %1387 = vperm.xlu0 %2188, %v1349_v37  }
 0x2b3   : > { %1422 = vperm.xlu2 %2190, %v1356_v38  }
 0x2b4   : > { %1417 = vperm.xlu1 %2189, %v1355_v17   ;;  %1412 = vperm.xlu0 %2188, %v1354_v39  }
 0x2bb   : > { %1437 = vperm.xlu2 %2190, %v1359_v8  }
 0x2bc   : > { %1432 = vperm.xlu1 %2189, %v1358_v24   ;;  %1427 = vperm.xlu0 %2188, %v1357_v33  }
 0x2c3   : > { %1452 = vperm.xlu2 %2190, %v1362_v40  }
 0x2c4   : > { %1447 = vperm.xlu1 %2189, %v1361_v42   ;;  %1442 = vperm.xlu0 %2188, %v1360_v5  }
 0x2cc   : > { %1457 = vperm.xlu0 %2188, %v1363_v43  }
 0x2fd   : > { %v1403_v41 = vpop.permute.xlu2 %1402 }
 0x2fe   : > { %v1464_v57 = vmul.f32 %v1403_v41, %v1368_v49 }
 0x305   : > { %v1408_v48 = vpop.permute.xlu2 %1407 }
 0x306   : > { %v1465_v50 = vmul.f32 %v1408_v48, %v1369_v35 }
 0x308   : > { %v1912_v51 = vpack.c.bf16 %v1465_v50, %v1464_v57 }
 0x30a   : > { %1940 = vst [vmem:[%s2858_s30 + $0x10] sm:$0xff] %v1912_v51  }
 0x30d   : > { %v1423_v3 = vpop.permute.xlu2 %1422 }
 0x30e   : > { %v1468_v20 = vmul.f32 %v1423_v3, %v1372_v59 }
 0x315   : > { %v1438_v4 = vpop.permute.xlu2 %1437 }
 0x316   : > { %v1393_v53 = vpop.permute.xlu1 %1392  ;;  %v1383_v44 = vpop.permute.xlu0 %1382  ;;  %v1471_v18 = vmul.f32 %v1438_v4, %v1375_v14 }
 0x317   : > { %v1462_v56 = vmul.f32 %v1393_v53, %v1366_v54  ;;  %v1460_v58 = vmul.f32 %v1383_v44, %v1364_v29 }
 0x31d   : > { %v1453_v32 = vpop.permute.xlu2 %1452 }
 0x31e   : > { %v1398_v28 = vpop.permute.xlu1 %1397  ;;  %v1388_v60 = vpop.permute.xlu0 %1387  ;;  %v1474_v37 = vmul.f32 %v1453_v32, %v1378_v47 }
 0x31f   : > { %v1463_v45 = vmul.f32 %v1398_v28, %v1367_v6  ;;  %v1461_v25 = vmul.f32 %v1388_v60, %v1365_v22 }
 0x321   : > { %v1907_v0 = vpack.c.bf16 %v1463_v45, %v1462_v56  ;;  %v1902_v1 = vpack.c.bf16 %v1461_v25, %v1460_v58 }
 0x323   : > { %1939 = vst [vmem:[%s2858_s30 + $0x8] sm:$0xff] %v1907_v0  }
 0x324   : > { %1903 = vst [vmem:[%s2858_s30] sm:$0xff] %v1902_v1  }
 0x326   : > { %v1418_v9 = vpop.permute.xlu1 %1417  ;;  %v1413_v62 = vpop.permute.xlu0 %1412 }
 0x327   : > { %v1467_v61 = vmul.f32 %v1418_v9, %v1371_v7  ;;  %v1466_v12 = vmul.f32 %v1413_v62, %v1370_v63 }
 0x329   : > { %v1917_v55 = vpack.c.bf16 %v1467_v61, %v1466_v12 }
 0x32b   : > { %1941 = vst [vmem:[%s2858_s30 + $0x18] sm:$0xff] %v1917_v55  }
 0x32e   : > { %v1433_v46 = vpop.permute.xlu1 %1432  ;;  %v1428_v16 = vpop.permute.xlu0 %1427 }
 0x32f   : > { %v1470_v21 = vmul.f32 %v1433_v46, %v1374_v15  ;;  %v1469_v11 = vmul.f32 %v1428_v16, %v1373_v19 }
 0x331   : > { %v1927_v34 = vpack.c.bf16 %v1471_v18, %v1470_v21  ;;  %v1922_v23 = vpack.c.bf16 %v1469_v11, %v1468_v20 }
 0x333   : > { %1943 = vst [vmem:[%s2858_s30 + $0x28] sm:$0xff] %v1927_v34  }
 0x334   : > { %1942 = vst [vmem:[%s2858_s30 + $0x20] sm:$0xff] %v1922_v23  }
 0x336   : > { %v1448_v27 = vpop.permute.xlu1 %1447  ;;  %v1443_v30 = vpop.permute.xlu0 %1442 }
 0x337   : > { %v1473_v10 = vmul.f32 %v1448_v27, %v1377_v52  ;;  %v1472_v13 = vmul.f32 %v1443_v30, %v1376_v26 }
 0x339   : > { %v1932_v2 = vpack.c.bf16 %v1473_v10, %v1472_v13 }
 0x33b   : > { %1944 = vst [vmem:[%s2858_s30 + $0x30] sm:$0xff] %v1932_v2  }
 0x33e   : > { %v1458_v36 = vpop.permute.xlu0 %1457 }
 0x33f   : > { %v1475_v38 = vmul.f32 %v1458_v36, %v1379_v31 }
 0x341   : > { %v1937_v17 = vpack.c.bf16 %v1475_v38, %v1474_v37 }
 0x343   : > { %1945 = vst [vmem:[%s2858_s30 + $0x38] sm:$0xff] %v1937_v17  }
 0x344 PF: > { %s3433_s11 = sld [smem:[#allocation28_spill]]  ;;  %s1521_s17 = sshll.u32 %s2858_s30, 4  ;;  %s1522_s17 = int_to_ptr.vmem [resolvable:$true] %s1521_s17 }
 0x345   : > { %s3434_s18 = sld [smem:[#allocation44_spill]]  ;;  %s1509_s14 = scalar_lea.sflag [#allocation8], %s2824_s4 }
 0x34a   : > { %s1898_s13 = sshll.u32 %s3433_s11, 6 }
 0x34b   : > { %s3435_s7 = smov %s3434_s18  ;;  %s1520_s0 = scalar_lea.hbm %s3434_s18, %s1898_s13 }
 0x34c   : > { %s1523_s27 = sshll.u32 %s1520_s0, 4  ;;  %s2319_s26 = scalar_lea.hbm %s3435_s7, 1344  ;;  %s1524_s27 = int_to_ptr.hbm [resolvable:$true] %s1523_s27 }
 0x34d   : > { %s2313_s3 = sshra.s32 %s1524_s27, 4  ;;  %s2314_s3 = int_to_ptr.hbm [resolvable:$true] %s2313_s3 }
 0x34e   : > { %s2315_s23 = scalar_lea.hbm %s2314_s3, 64  ;;  %p2320_p11 = scmp.lt.s32.totalorder %s2314_s3, %s3435_s7 }
 0x34f   : > { %p2316_p7 = scmp.ne.s32.totalorder %s2314_s3, %s2315_s23  ;;  %p2321_p0 = scmp.lt.s32.totalorder %s2319_s26, %s2315_s23 }
 0x351   : > { %p2317_p10 = pnand %p2316_p7, %p2714_p5  ;;  %p2322_p2 = por %p2321_p0, %p2320_p11 }
 0x353   : > { %p2318_p9 = pneg %p2317_p10 }
 0x355   : > { %p2323_p8 = pnand %p2322_p2, %p2318_p9 }
 0x357   : > { %2326 = shalt.err (!%p2323_p8)
}
 0x358   : > { %s2480_s4 = smov 64   ;;  %s2481_s1 = smov 4  }
 0x359   : > { %1980 = dma.vmem_to_hbm [thread:$0]  (%p2714_p5), %s1522_s17, 1024, %s1524_s27, %s1509_s14, %s2480_s4, %s2480_s4, %s2481_s1  }
 0x35a PF: > { %p1986_p1 = scmp.ge.s32.totalorder %s2471_s22, 2  ;;  %s1538_s24 = sand.u32 1, %s2443_s15  }
 0x35b   : > { %s1539_s19 = scalar_lea.sflag [#allocation8], %s1538_s24 }
 0x35c   : > { %p1983_p6 = pnand %p1986_p1, %p2724_p4 }
 0x35e   : > { %p1984_p3 = pneg %p1983_p6 }
 0x360   : > { %2406 = dma.done.wait (%p1984_p3), %s1539_s19, 1024  }
 0x361   : > { %2408 = vsyncadd (%p1984_p3), %s1539_s19, 4294966272  ;;  %s39_s22 = sadd.s32 1, %s2471_s22   ;;  %s3438_s6 = sld [smem:[#allocation21_spill]] }
 0x362   : > { %p3260_p12 = scmp.ge.s32.totalorder %s39_s22, 44   ;;  %s3439_s1 = sld [smem:[#allocation38_spill]] }
 0x363   : > { %s3440_s10 = sld [smem:[#allocation22_spill]]  ;;  %s3450_s0 = smov %s2415_s9 }
 0x364   : > { %s3441_s11 = sld [smem:[#allocation23_spill]]  ;;  %s3452_s15 = smov %s2447_s16 }
 0x365   : > { %s3442_s12 = sld [smem:[#allocation36_spill]]  ;;  %s3454_s18 = smov %s2463_s20 }
 0x366   : > { %s3443_s13 = sld [smem:[#allocation25_spill]] }
 0x367   : > { %s3444_s14 = sld [smem:[#allocation35_spill]]  ;;  %s3451_s9 = smov %s3438_s6 }
 0x368   : > { %s3445_s2 = sld [smem:[#allocation26_spill]] }
 0x369   : > { %s3446_s17 = sld [smem:[#allocation33_spill]] }
 0x36a   : > { %s3447_s19 = sld [smem:[#allocation29_spill]] }
 0x36b   : > { %s3448_s29 = sld [smem:[#allocation30_spill]] }
 0x36c   : > { %s3449_s21 = sld [smem:[#allocation31_spill]] }
 0x36d   :  { %38 = sbr.rel (!%p3260_p12) target bundleno = 25 (0x19), region = 173 }
 0x36e   : > { %s3453_s16 = smov %s3445_s2 }
 0x371   : > { %s3455_s20 = smov %s3448_s29 }
 0x372   :  { %1545 = vsyncpa [#allocation7], 1 }
 0x373   :  { %1547 = vsyncpa [#allocation7 + $0x1], 1 }
 0x374   :  { %1548 = vsyncpa [#allocation11], 1 }
 0x375   :  { %1550 = vsyncpa [#allocation11 + $0x1], 1 }
 0x376   :  { %1551 = vsyncpa [#allocation8], 1 }
 0x377   :  { %1553 = vsyncpa [#allocation8 + $0x1], 1 }

</bundles_post_ra>
